<compile_context>
chip_gen: v6e
topology: v6e:2x2x1
jax: 0.10.0
libtpu: 0.0.40
codegen_flags: <defaults>
</compile_context>

<pallas_src>
import functools

import jax
import jax.numpy as jnp
from jax.experimental import pallas as pl
from jax.experimental.pallas import tpu as pltpu


def _lstm_kernel(x_ref, w_ih_ref, w_hh_ref, b_ref, out_ref, hseq_ref,
                 *, num_layers, hidden_dim, seq_len, batch_pad, in_pad):
    """All refs live in VMEM (arrays are tiny at these shapes).

    x_ref:    (T, Bp, Dp)   zero-padded input sequence (Dp = max(D, H))
    w_ih_ref: (L, Dp, 4H)   input->gates weights, transposed, gate-reordered,
                            zero-padded on unused rows
    w_hh_ref: (L, H, 4H)    hidden->gates weights, transposed, gate-reordered
    b_ref:    (L, 1, 4H)    combined bias (b_ih + b_hh), gate-reordered
    out_ref:  (T, Bp, H)    last layer's hidden sequence (batch-padded)
    hseq_ref: (T, Bp, H)    scratch: inter-layer hidden sequence buffer
    Gate order inside the kernel is (i, f, o, g).
    """
    T, Bp, H, Dp = seq_len, batch_pad, hidden_dim, in_pad

    for layer in range(num_layers):              # static unroll over layers
        w_ih = w_ih_ref[layer]                   # (Dp, 4H)
        w_hh = w_hh_ref[layer]                   # (H, 4H)
        b = b_ref[layer]                         # (1, 4H)

        # ---- hoisted input projection: one MXU matmul for the whole sequence
        if layer == 0:
            lhs = x_ref[...].reshape(T * Bp, Dp)         # (T*Bp, Dp)
        else:
            lhs = hseq_ref[...].reshape(T * Bp, H)       # (T*Bp, H)
            w_ih = w_ih[:H, :]                           # drop zero-pad rows
        gx = jnp.dot(lhs, w_ih, preferred_element_type=jnp.float32) + b
        gx = gx.reshape(T, Bp, 4 * H)                    # (T, Bp, 4H)

        # ---- serial recurrence, fully unrolled; (h, c) stay in vregs -------
        h = jnp.zeros((Bp, H), jnp.float32)
        c = jnp.zeros((Bp, H), jnp.float32)
        last = layer == num_layers - 1
        for t in range(T):
            gates = (jnp.dot(h, w_hh, preferred_element_type=jnp.float32)
                     + gx[t])                            # (Bp, 4H)
            # (i, f, o) are contiguous -> one sigmoid over a 3H slab.
            sig = jax.nn.sigmoid(gates[:, : 3 * H])
            i_g = sig[:, 0 * H:1 * H]
            f_g = sig[:, 1 * H:2 * H]
            o_g = sig[:, 2 * H:3 * H]
            g_g = jnp.tanh(gates[:, 3 * H:])
            c = f_g * c + i_g * g_g
            h = o_g * jnp.tanh(c)
            if last:
                out_ref[t] = h          # final layer: write output directly
            else:
                hseq_ref[t] = h         # becomes next layer's input sequence


def _reorder_gates(a):
    """Permute PyTorch gate blocks (i, f, g, o) -> (i, f, o, g) along axis 0."""
    i, f, g, o = jnp.split(a, 4, axis=0)
    return jnp.concatenate([i, f, o, g], axis=0)


def lstm_feature_extractor(x, params, *, hidden_dim, num_layers):
    """x: (T, B, D) float32 -> (T, B*H) float32, matching the PyTorch module."""
    T, B, D = x.shape
    H = hidden_dim
    Dp = max(D, H)                      # shared feature pad for the w_ih stack
    Bp = ((B + 7) // 8) * 8             # pad batch to full 8-sublane tiles

    # Pack parameters: stacked, transposed, gate-reordered, zero-padded.
    w_ih_stack = jnp.zeros((num_layers, Dp, 4 * H), jnp.float32)
    w_hh_stack = jnp.zeros((num_layers, H, 4 * H), jnp.float32)
    b_stack = jnp.zeros((num_layers, 1, 4 * H), jnp.float32)
    for l in range(num_layers):
        w_ih, w_hh, b_ih, b_hh = params[l]   # (4H,Din),(4H,H),(4H,),(4H,)
        din = w_ih.shape[1]
        w_ih_stack = w_ih_stack.at[l, :din, :].set(_reorder_gates(w_ih).T)
        w_hh_stack = w_hh_stack.at[l].set(_reorder_gates(w_hh).T)
        b_stack = b_stack.at[l, 0, :].set(_reorder_gates(b_ih + b_hh))

    x_pad = jnp.zeros((T, Bp, Dp), jnp.float32).at[:, :B, :D].set(x)

    kernel = functools.partial(_lstm_kernel, num_layers=num_layers,
                               hidden_dim=H, seq_len=T,
                               batch_pad=Bp, in_pad=Dp)

    out = pl.pallas_call(
        kernel,
        out_shape=jax.ShapeDtypeStruct((T, Bp, H), jnp.float32),
        in_specs=[pl.BlockSpec(memory_space=pltpu.MemorySpace.VMEM)] * 4,
        out_specs=pl.BlockSpec(memory_space=pltpu.MemorySpace.VMEM),
        scratch_shapes=[
            pltpu.VMEM((T, Bp, H), jnp.float32),   # inter-layer hidden sequence
        ],
        # TODO(synk): if T/H/L scale up (esp. v7x 64 MiB VMEM), add a grid over
        # time / stream weights per layer instead of keeping everything resident.
    )(x_pad, w_ih_stack, w_hh_stack, b_stack)

    return out[:, :B, :].reshape(T, -1)             # out.reshape(out.shape[0], -1)


def lstm_reference(x, params, *, hidden_dim, num_layers):
    """Pure-JAX reference mirroring torch.nn.LSTM semantics (i,f,g,o order)."""
    T, B, _ = x.shape
    H = hidden_dim
    seq = x
    for l in range(num_layers):
        w_ih, w_hh, b_ih, b_hh = params[l]

        def step(carry, x_t):
            h, c = carry
            gates = x_t @ w_ih.T + h @ w_hh.T + b_ih + b_hh
            i = jax.nn.sigmoid(gates[:, 0 * H:1 * H])
            f = jax.nn.sigmoid(gates[:, 1 * H:2 * H])
            g = jnp.tanh(gates[:, 2 * H:3 * H])
            o = jax.nn.sigmoid(gates[:, 3 * H:4 * H])
            c = f * c + i * g
            h = o * jnp.tanh(c)
            return (h, c), h

        init = (jnp.zeros((B, H), jnp.float32), jnp.zeros((B, H), jnp.float32))
        _, seq = jax.lax.scan(step, init, seq)
    return seq.reshape(T, -1)


def init_lstm_params(key, input_dim, hidden_dim, num_layers):
    """Deterministic params with nn.LSTM shapes: uniform(-1/sqrt(H), 1/sqrt(H))."""
    k = 1.0 / jnp.sqrt(jnp.float32(hidden_dim))
    params = []
    for l in range(num_layers):
        din = input_dim if l == 0 else hidden_dim
        key, k1, k2, k3, k4 = jax.random.split(key, 5)
        w_ih = jax.random.uniform(k1, (4 * hidden_dim, din), jnp.float32, -k, k)
        w_hh = jax.random.uniform(k2, (4 * hidden_dim, hidden_dim), jnp.float32, -k, k)
        b_ih = jax.random.uniform(k3, (4 * hidden_dim,), jnp.float32, -k, k)
        b_hh = jax.random.uniform(k4, (4 * hidden_dim,), jnp.float32, -k, k)
        params.append((w_ih, w_hh, b_ih, b_hh))
    return params


if __name__ == "__main__":
    # Small shapes consistent with the module: seq=8, batch=4, input_dim=16,
    # hidden_dim=32, num_layers=2.
    T, B, D, H, L = 8, 4, 16, 32, 2

    key = jax.random.PRNGKey(0)
    kx, kp = jax.random.split(key)
    x = jax.random.normal(kx, (T, B, D), jnp.float32)
    params = init_lstm_params(kp, D, H, L)

    out = lstm_feature_extractor(x, params, hidden_dim=H, num_layers=L)
    out = jax.block_until_ready(out)

    ref = lstm_reference(x, params, hidden_dim=H, num_layers=L)
    assert out.shape == (T, B * H), out.shape
    assert jnp.allclose(out, ref, atol=1e-4, rtol=1e-4), \
        float(jnp.max(jnp.abs(out - ref)))

    print("KERNEL_OK")
</pallas_src>

<mosaic_0001>
module attributes {stable_mosaic.version = 11 : i64} {
  func.func @_lstm_kernel(%arg0: memref<8x8x32xf32, #tpu.memory_space<vmem>>, %arg1: memref<2x32x128xf32, #tpu.memory_space<vmem>>, %arg2: memref<2x32x128xf32, #tpu.memory_space<vmem>>, %arg3: memref<2x1x128xf32, #tpu.memory_space<vmem>>, %arg4: memref<8x8x32xf32, #tpu.memory_space<vmem>>, %arg5: memref<8x8x32xf32, #tpu.memory_space<vmem>>) attributes {dimension_semantics = [], scalar_prefetch = 0 : i64, scratch_operands = 1 : i64, tpu.core_type = #tpu.core_type<tc>} {
    %c0 = arith.constant 0 : index
    %c0_0 = arith.constant 0 : index
    %c0_1 = arith.constant 0 : index
    %0 = vector.load %arg1[%c0, %c0_0, %c0_1] : memref<2x32x128xf32, #tpu.memory_space<vmem>>, vector<1x32x128xf32>
    %1 = vector.shape_cast %0 : vector<1x32x128xf32> to vector<32x128xf32>
    %c0_2 = arith.constant 0 : index
    %c0_3 = arith.constant 0 : index
    %c0_4 = arith.constant 0 : index
    %2 = vector.load %arg2[%c0_2, %c0_3, %c0_4] : memref<2x32x128xf32, #tpu.memory_space<vmem>>, vector<1x32x128xf32>
    %3 = vector.shape_cast %2 : vector<1x32x128xf32> to vector<32x128xf32>
    %c0_5 = arith.constant 0 : index
    %c0_6 = arith.constant 0 : index
    %c0_7 = arith.constant 0 : index
    %4 = vector.load %arg3[%c0_5, %c0_6, %c0_7] : memref<2x1x128xf32, #tpu.memory_space<vmem>>, vector<1x1x128xf32>
    %5 = vector.shape_cast %4 : vector<1x1x128xf32> to vector<1x128xf32>
    %c0_8 = arith.constant 0 : index
    %c0_9 = arith.constant 0 : index
    %c0_10 = arith.constant 0 : index
    %6 = vector.load %arg0[%c0_8, %c0_9, %c0_10] : memref<8x8x32xf32, #tpu.memory_space<vmem>>, vector<8x8x32xf32>
    %7 = vector.shape_cast %6 : vector<8x8x32xf32> to vector<64x32xf32>
    %cst = arith.constant dense<0.000000e+00> : vector<64x128xf32>
    %8 = tpu.matmul %7, %1, %cst {dimension_numbers = #tpu.dot_dimension_numbers<[1], [0], [0], [1], [0, 0, 1, 1], [], []>} : vector<64x32xf32>, vector<32x128xf32>, vector<64x128xf32> -> vector<64x128xf32>
    %9 = vector.broadcast %5 : vector<1x128xf32> to vector<64x128xf32>
    %10 = arith.addf %8, %9 : vector<64x128xf32>
    %11 = vector.shape_cast %10 : vector<64x128xf32> to vector<8x8x128xf32>
    %cst_11 = arith.constant 0.000000e+00 : f32
    %12 = vector.broadcast %cst_11 : f32 to vector<8x32xf32>
    %cst_12 = arith.constant 0.000000e+00 : f32
    %13 = vector.broadcast %cst_12 : f32 to vector<8x32xf32>
    %cst_13 = arith.constant dense<0.000000e+00> : vector<8x128xf32>
    %14 = tpu.matmul %12, %3, %cst_13 {dimension_numbers = #tpu.dot_dimension_numbers<[1], [0], [0], [1], [0, 0, 1, 1], [], []>} : vector<8x32xf32>, vector<32x128xf32>, vector<8x128xf32> -> vector<8x128xf32>
    %15 = vector.extract_strided_slice %11 {offsets = [0, 0, 0], sizes = [1, 8, 128], strides = [1, 1, 1]} : vector<8x8x128xf32> to vector<1x8x128xf32>
    %16 = vector.shape_cast %15 : vector<1x8x128xf32> to vector<8x128xf32>
    %17 = arith.addf %14, %16 : vector<8x128xf32>
    %18 = vector.extract_strided_slice %17 {offsets = [0, 0], sizes = [8, 96], strides = [1, 1]} : vector<8x128xf32> to vector<8x96xf32>
    %19 = arith.negf %18 : vector<8x96xf32>
    %20 = math.exp %19 : vector<8x96xf32>
    %cst_14 = arith.constant 1.000000e+00 : f32
    %21 = vector.broadcast %cst_14 : f32 to vector<8x96xf32>
    %22 = arith.addf %21, %20 : vector<8x96xf32>
    %23 = arith.divf %21, %22 : vector<8x96xf32>
    %24 = vector.extract_strided_slice %23 {offsets = [0, 0], sizes = [8, 32], strides = [1, 1]} : vector<8x96xf32> to vector<8x32xf32>
    %25 = vector.extract_strided_slice %23 {offsets = [0, 32], sizes = [8, 32], strides = [1, 1]} : vector<8x96xf32> to vector<8x32xf32>
    %26 = vector.extract_strided_slice %23 {offsets = [0, 64], sizes = [8, 32], strides = [1, 1]} : vector<8x96xf32> to vector<8x32xf32>
    %27 = vector.extract_strided_slice %17 {offsets = [0, 96], sizes = [8, 32], strides = [1, 1]} : vector<8x128xf32> to vector<8x32xf32>
    %28 = math.tanh %27 : vector<8x32xf32>
    %29 = arith.mulf %25, %13 : vector<8x32xf32>
    %30 = arith.mulf %24, %28 : vector<8x32xf32>
    %31 = arith.addf %29, %30 : vector<8x32xf32>
    %32 = math.tanh %31 : vector<8x32xf32>
    %33 = arith.mulf %26, %32 : vector<8x32xf32>
    %c0_15 = arith.constant 0 : index
    %c0_16 = arith.constant 0 : index
    %c0_17 = arith.constant 0 : index
    %34 = vector.load %arg5[%c0_15, %c0_16, %c0_17] : memref<8x8x32xf32, #tpu.memory_space<vmem>>, vector<1x8x32xf32>
    %35 = vector.shape_cast %34 : vector<1x8x32xf32> to vector<8x32xf32>
    %36 = vector.shape_cast %33 : vector<8x32xf32> to vector<1x8x32xf32>
    tpu.vector_store %arg5[%c0_15, %c0_16, %c0_17], %36 {strides = array<i32>} : memref<8x8x32xf32, #tpu.memory_space<vmem>>, vector<1x8x32xf32>,
    %cst_18 = arith.constant dense<0.000000e+00> : vector<8x128xf32>
    %37 = tpu.matmul %33, %3, %cst_18 {dimension_numbers = #tpu.dot_dimension_numbers<[1], [0], [0], [1], [0, 0, 1, 1], [], []>} : vector<8x32xf32>, vector<32x128xf32>, vector<8x128xf32> -> vector<8x128xf32>
    %38 = vector.extract_strided_slice %11 {offsets = [1, 0, 0], sizes = [1, 8, 128], strides = [1, 1, 1]} : vector<8x8x128xf32> to vector<1x8x128xf32>
    %39 = vector.shape_cast %38 : vector<1x8x128xf32> to vector<8x128xf32>
    %40 = arith.addf %37, %39 : vector<8x128xf32>
    %41 = vector.extract_strided_slice %40 {offsets = [0, 0], sizes = [8, 96], strides = [1, 1]} : vector<8x128xf32> to vector<8x96xf32>
    %42 = arith.negf %41 : vector<8x96xf32>
    %43 = math.exp %42 : vector<8x96xf32>
    %cst_19 = arith.constant 1.000000e+00 : f32
    %44 = vector.broadcast %cst_19 : f32 to vector<8x96xf32>
    %45 = arith.addf %44, %43 : vector<8x96xf32>
    %46 = arith.divf %44, %45 : vector<8x96xf32>
    %47 = vector.extract_strided_slice %46 {offsets = [0, 0], sizes = [8, 32], strides = [1, 1]} : vector<8x96xf32> to vector<8x32xf32>
    %48 = vector.extract_strided_slice %46 {offsets = [0, 32], sizes = [8, 32], strides = [1, 1]} : vector<8x96xf32> to vector<8x32xf32>
    %49 = vector.extract_strided_slice %46 {offsets = [0, 64], sizes = [8, 32], strides = [1, 1]} : vector<8x96xf32> to vector<8x32xf32>
    %50 = vector.extract_strided_slice %40 {offsets = [0, 96], sizes = [8, 32], strides = [1, 1]} : vector<8x128xf32> to vector<8x32xf32>
    %51 = math.tanh %50 : vector<8x32xf32>
    %52 = arith.mulf %48, %31 : vector<8x32xf32>
    %53 = arith.mulf %47, %51 : vector<8x32xf32>
    %54 = arith.addf %52, %53 : vector<8x32xf32>
    %55 = math.tanh %54 : vector<8x32xf32>
    %56 = arith.mulf %49, %55 : vector<8x32xf32>
    %c1 = arith.constant 1 : index
    %c0_20 = arith.constant 0 : index
    %c0_21 = arith.constant 0 : index
    %57 = vector.load %arg5[%c1, %c0_20, %c0_21] : memref<8x8x32xf32, #tpu.memory_space<vmem>>, vector<1x8x32xf32>
    %58 = vector.shape_cast %57 : vector<1x8x32xf32> to vector<8x32xf32>
    %59 = vector.shape_cast %56 : vector<8x32xf32> to vector<1x8x32xf32>
    tpu.vector_store %arg5[%c1, %c0_20, %c0_21], %59 {strides = array<i32>} : memref<8x8x32xf32, #tpu.memory_space<vmem>>, vector<1x8x32xf32>,
    %cst_22 = arith.constant dense<0.000000e+00> : vector<8x128xf32>
    %60 = tpu.matmul %56, %3, %cst_22 {dimension_numbers = #tpu.dot_dimension_numbers<[1], [0], [0], [1], [0, 0, 1, 1], [], []>} : vector<8x32xf32>, vector<32x128xf32>, vector<8x128xf32> -> vector<8x128xf32>
    %61 = vector.extract_strided_slice %11 {offsets = [2, 0, 0], sizes = [1, 8, 128], strides = [1, 1, 1]} : vector<8x8x128xf32> to vector<1x8x128xf32>
    %62 = vector.shape_cast %61 : vector<1x8x128xf32> to vector<8x128xf32>
    %63 = arith.addf %60, %62 : vector<8x128xf32>
    %64 = vector.extract_strided_slice %63 {offsets = [0, 0], sizes = [8, 96], strides = [1, 1]} : vector<8x128xf32> to vector<8x96xf32>
    %65 = arith.negf %64 : vector<8x96xf32>
    %66 = math.exp %65 : vector<8x96xf32>
    %cst_23 = arith.constant 1.000000e+00 : f32
    %67 = vector.broadcast %cst_23 : f32 to vector<8x96xf32>
    %68 = arith.addf %67, %66 : vector<8x96xf32>
    %69 = arith.divf %67, %68 : vector<8x96xf32>
    %70 = vector.extract_strided_slice %69 {offsets = [0, 0], sizes = [8, 32], strides = [1, 1]} : vector<8x96xf32> to vector<8x32xf32>
    %71 = vector.extract_strided_slice %69 {offsets = [0, 32], sizes = [8, 32], strides = [1, 1]} : vector<8x96xf32> to vector<8x32xf32>
    %72 = vector.extract_strided_slice %69 {offsets = [0, 64], sizes = [8, 32], strides = [1, 1]} : vector<8x96xf32> to vector<8x32xf32>
    %73 = vector.extract_strided_slice %63 {offsets = [0, 96], sizes = [8, 32], strides = [1, 1]} : vector<8x128xf32> to vector<8x32xf32>
    %74 = math.tanh %73 : vector<8x32xf32>
    %75 = arith.mulf %71, %54 : vector<8x32xf32>
    %76 = arith.mulf %70, %74 : vector<8x32xf32>
    %77 = arith.addf %75, %76 : vector<8x32xf32>
    %78 = math.tanh %77 : vector<8x32xf32>
    %79 = arith.mulf %72, %78 : vector<8x32xf32>
    %c2 = arith.constant 2 : index
    %c0_24 = arith.constant 0 : index
    %c0_25 = arith.constant 0 : index
    %80 = vector.load %arg5[%c2, %c0_24, %c0_25] : memref<8x8x32xf32, #tpu.memory_space<vmem>>, vector<1x8x32xf32>
    %81 = vector.shape_cast %80 : vector<1x8x32xf32> to vector<8x32xf32>
    %82 = vector.shape_cast %79 : vector<8x32xf32> to vector<1x8x32xf32>
    tpu.vector_store %arg5[%c2, %c0_24, %c0_25], %82 {strides = array<i32>} : memref<8x8x32xf32, #tpu.memory_space<vmem>>, vector<1x8x32xf32>,
    %cst_26 = arith.constant dense<0.000000e+00> : vector<8x128xf32>
    %83 = tpu.matmul %79, %3, %cst_26 {dimension_numbers = #tpu.dot_dimension_numbers<[1], [0], [0], [1], [0, 0, 1, 1], [], []>} : vector<8x32xf32>, vector<32x128xf32>, vector<8x128xf32> -> vector<8x128xf32>
    %84 = vector.extract_strided_slice %11 {offsets = [3, 0, 0], sizes = [1, 8, 128], strides = [1, 1, 1]} : vector<8x8x128xf32> to vector<1x8x128xf32>
    %85 = vector.shape_cast %84 : vector<1x8x128xf32> to vector<8x128xf32>
    %86 = arith.addf %83, %85 : vector<8x128xf32>
    %87 = vector.extract_strided_slice %86 {offsets = [0, 0], sizes = [8, 96], strides = [1, 1]} : vector<8x128xf32> to vector<8x96xf32>
    %88 = arith.negf %87 : vector<8x96xf32>
    %89 = math.exp %88 : vector<8x96xf32>
    %cst_27 = arith.constant 1.000000e+00 : f32
    %90 = vector.broadcast %cst_27 : f32 to vector<8x96xf32>
    %91 = arith.addf %90, %89 : vector<8x96xf32>
    %92 = arith.divf %90, %91 : vector<8x96xf32>
    %93 = vector.extract_strided_slice %92 {offsets = [0, 0], sizes = [8, 32], strides = [1, 1]} : vector<8x96xf32> to vector<8x32xf32>
    %94 = vector.extract_strided_slice %92 {offsets = [0, 32], sizes = [8, 32], strides = [1, 1]} : vector<8x96xf32> to vector<8x32xf32>
    %95 = vector.extract_strided_slice %92 {offsets = [0, 64], sizes = [8, 32], strides = [1, 1]} : vector<8x96xf32> to vector<8x32xf32>
    %96 = vector.extract_strided_slice %86 {offsets = [0, 96], sizes = [8, 32], strides = [1, 1]} : vector<8x128xf32> to vector<8x32xf32>
    %97 = math.tanh %96 : vector<8x32xf32>
    %98 = arith.mulf %94, %77 : vector<8x32xf32>
    %99 = arith.mulf %93, %97 : vector<8x32xf32>
    %100 = arith.addf %98, %99 : vector<8x32xf32>
    %101 = math.tanh %100 : vector<8x32xf32>
    %102 = arith.mulf %95, %101 : vector<8x32xf32>
    %c3 = arith.constant 3 : index
    %c0_28 = arith.constant 0 : index
    %c0_29 = arith.constant 0 : index
    %103 = vector.load %arg5[%c3, %c0_28, %c0_29] : memref<8x8x32xf32, #tpu.memory_space<vmem>>, vector<1x8x32xf32>
    %104 = vector.shape_cast %103 : vector<1x8x32xf32> to vector<8x32xf32>
    %105 = vector.shape_cast %102 : vector<8x32xf32> to vector<1x8x32xf32>
    tpu.vector_store %arg5[%c3, %c0_28, %c0_29], %105 {strides = array<i32>} : memref<8x8x32xf32, #tpu.memory_space<vmem>>, vector<1x8x32xf32>,
    %cst_30 = arith.constant dense<0.000000e+00> : vector<8x128xf32>
    %106 = tpu.matmul %102, %3, %cst_30 {dimension_numbers = #tpu.dot_dimension_numbers<[1], [0], [0], [1], [0, 0, 1, 1], [], []>} : vector<8x32xf32>, vector<32x128xf32>, vector<8x128xf32> -> vector<8x128xf32>
    %107 = vector.extract_strided_slice %11 {offsets = [4, 0, 0], sizes = [1, 8, 128], strides = [1, 1, 1]} : vector<8x8x128xf32> to vector<1x8x128xf32>
    %108 = vector.shape_cast %107 : vector<1x8x128xf32> to vector<8x128xf32>
    %109 = arith.addf %106, %108 : vector<8x128xf32>
    %110 = vector.extract_strided_slice %109 {offsets = [0, 0], sizes = [8, 96], strides = [1, 1]} : vector<8x128xf32> to vector<8x96xf32>
    %111 = arith.negf %110 : vector<8x96xf32>
    %112 = math.exp %111 : vector<8x96xf32>
    %cst_31 = arith.constant 1.000000e+00 : f32
    %113 = vector.broadcast %cst_31 : f32 to vector<8x96xf32>
    %114 = arith.addf %113, %112 : vector<8x96xf32>
    %115 = arith.divf %113, %114 : vector<8x96xf32>
    %116 = vector.extract_strided_slice %115 {offsets = [0, 0], sizes = [8, 32], strides = [1, 1]} : vector<8x96xf32> to vector<8x32xf32>
    %117 = vector.extract_strided_slice %115 {offsets = [0, 32], sizes = [8, 32], strides = [1, 1]} : vector<8x96xf32> to vector<8x32xf32>
    %118 = vector.extract_strided_slice %115 {offsets = [0, 64], sizes = [8, 32], strides = [1, 1]} : vector<8x96xf32> to vector<8x32xf32>
    %119 = vector.extract_strided_slice %109 {offsets = [0, 96], sizes = [8, 32], strides = [1, 1]} : vector<8x128xf32> to vector<8x32xf32>
    %120 = math.tanh %119 : vector<8x32xf32>
    %121 = arith.mulf %117, %100 : vector<8x32xf32>
    %122 = arith.mulf %116, %120 : vector<8x32xf32>
    %123 = arith.addf %121, %122 : vector<8x32xf32>
    %124 = math.tanh %123 : vector<8x32xf32>
    %125 = arith.mulf %118, %124 : vector<8x32xf32>
    %c4 = arith.constant 4 : index
    %c0_32 = arith.constant 0 : index
    %c0_33 = arith.constant 0 : index
    %126 = vector.load %arg5[%c4, %c0_32, %c0_33] : memref<8x8x32xf32, #tpu.memory_space<vmem>>, vector<1x8x32xf32>
    %127 = vector.shape_cast %126 : vector<1x8x32xf32> to vector<8x32xf32>
    %128 = vector.shape_cast %125 : vector<8x32xf32> to vector<1x8x32xf32>
    tpu.vector_store %arg5[%c4, %c0_32, %c0_33], %128 {strides = array<i32>} : memref<8x8x32xf32, #tpu.memory_space<vmem>>, vector<1x8x32xf32>,
    %cst_34 = arith.constant dense<0.000000e+00> : vector<8x128xf32>
    %129 = tpu.matmul %125, %3, %cst_34 {dimension_numbers = #tpu.dot_dimension_numbers<[1], [0], [0], [1], [0, 0, 1, 1], [], []>} : vector<8x32xf32>, vector<32x128xf32>, vector<8x128xf32> -> vector<8x128xf32>
    %130 = vector.extract_strided_slice %11 {offsets = [5, 0, 0], sizes = [1, 8, 128], strides = [1, 1, 1]} : vector<8x8x128xf32> to vector<1x8x128xf32>
    %131 = vector.shape_cast %130 : vector<1x8x128xf32> to vector<8x128xf32>
    %132 = arith.addf %129, %131 : vector<8x128xf32>
    %133 = vector.extract_strided_slice %132 {offsets = [0, 0], sizes = [8, 96], strides = [1, 1]} : vector<8x128xf32> to vector<8x96xf32>
    %134 = arith.negf %133 : vector<8x96xf32>
    %135 = math.exp %134 : vector<8x96xf32>
    %cst_35 = arith.constant 1.000000e+00 : f32
    %136 = vector.broadcast %cst_35 : f32 to vector<8x96xf32>
    %137 = arith.addf %136, %135 : vector<8x96xf32>
    %138 = arith.divf %136, %137 : vector<8x96xf32>
    %139 = vector.extract_strided_slice %138 {offsets = [0, 0], sizes = [8, 32], strides = [1, 1]} : vector<8x96xf32> to vector<8x32xf32>
    %140 = vector.extract_strided_slice %138 {offsets = [0, 32], sizes = [8, 32], strides = [1, 1]} : vector<8x96xf32> to vector<8x32xf32>
    %141 = vector.extract_strided_slice %138 {offsets = [0, 64], sizes = [8, 32], strides = [1, 1]} : vector<8x96xf32> to vector<8x32xf32>
    %142 = vector.extract_strided_slice %132 {offsets = [0, 96], sizes = [8, 32], strides = [1, 1]} : vector<8x128xf32> to vector<8x32xf32>
    %143 = math.tanh %142 : vector<8x32xf32>
    %144 = arith.mulf %140, %123 : vector<8x32xf32>
    %145 = arith.mulf %139, %143 : vector<8x32xf32>
    %146 = arith.addf %144, %145 : vector<8x32xf32>
    %147 = math.tanh %146 : vector<8x32xf32>
    %148 = arith.mulf %141, %147 : vector<8x32xf32>
    %c5 = arith.constant 5 : index
    %c0_36 = arith.constant 0 : index
    %c0_37 = arith.constant 0 : index
    %149 = vector.load %arg5[%c5, %c0_36, %c0_37] : memref<8x8x32xf32, #tpu.memory_space<vmem>>, vector<1x8x32xf32>
    %150 = vector.shape_cast %149 : vector<1x8x32xf32> to vector<8x32xf32>
    %151 = vector.shape_cast %148 : vector<8x32xf32> to vector<1x8x32xf32>
    tpu.vector_store %arg5[%c5, %c0_36, %c0_37], %151 {strides = array<i32>} : memref<8x8x32xf32, #tpu.memory_space<vmem>>, vector<1x8x32xf32>,
    %cst_38 = arith.constant dense<0.000000e+00> : vector<8x128xf32>
    %152 = tpu.matmul %148, %3, %cst_38 {dimension_numbers = #tpu.dot_dimension_numbers<[1], [0], [0], [1], [0, 0, 1, 1], [], []>} : vector<8x32xf32>, vector<32x128xf32>, vector<8x128xf32> -> vector<8x128xf32>
    %153 = vector.extract_strided_slice %11 {offsets = [6, 0, 0], sizes = [1, 8, 128], strides = [1, 1, 1]} : vector<8x8x128xf32> to vector<1x8x128xf32>
    %154 = vector.shape_cast %153 : vector<1x8x128xf32> to vector<8x128xf32>
    %155 = arith.addf %152, %154 : vector<8x128xf32>
    %156 = vector.extract_strided_slice %155 {offsets = [0, 0], sizes = [8, 96], strides = [1, 1]} : vector<8x128xf32> to vector<8x96xf32>
    %157 = arith.negf %156 : vector<8x96xf32>
    %158 = math.exp %157 : vector<8x96xf32>
    %cst_39 = arith.constant 1.000000e+00 : f32
    %159 = vector.broadcast %cst_39 : f32 to vector<8x96xf32>
    %160 = arith.addf %159, %158 : vector<8x96xf32>
    %161 = arith.divf %159, %160 : vector<8x96xf32>
    %162 = vector.extract_strided_slice %161 {offsets = [0, 0], sizes = [8, 32], strides = [1, 1]} : vector<8x96xf32> to vector<8x32xf32>
    %163 = vector.extract_strided_slice %161 {offsets = [0, 32], sizes = [8, 32], strides = [1, 1]} : vector<8x96xf32> to vector<8x32xf32>
    %164 = vector.extract_strided_slice %161 {offsets = [0, 64], sizes = [8, 32], strides = [1, 1]} : vector<8x96xf32> to vector<8x32xf32>
    %165 = vector.extract_strided_slice %155 {offsets = [0, 96], sizes = [8, 32], strides = [1, 1]} : vector<8x128xf32> to vector<8x32xf32>
    %166 = math.tanh %165 : vector<8x32xf32>
    %167 = arith.mulf %163, %146 : vector<8x32xf32>
    %168 = arith.mulf %162, %166 : vector<8x32xf32>
    %169 = arith.addf %167, %168 : vector<8x32xf32>
    %170 = math.tanh %169 : vector<8x32xf32>
    %171 = arith.mulf %164, %170 : vector<8x32xf32>
    %c6 = arith.constant 6 : index
    %c0_40 = arith.constant 0 : index
    %c0_41 = arith.constant 0 : index
    %172 = vector.load %arg5[%c6, %c0_40, %c0_41] : memref<8x8x32xf32, #tpu.memory_space<vmem>>, vector<1x8x32xf32>
    %173 = vector.shape_cast %172 : vector<1x8x32xf32> to vector<8x32xf32>
    %174 = vector.shape_cast %171 : vector<8x32xf32> to vector<1x8x32xf32>
    tpu.vector_store %arg5[%c6, %c0_40, %c0_41], %174 {strides = array<i32>} : memref<8x8x32xf32, #tpu.memory_space<vmem>>, vector<1x8x32xf32>,
    %cst_42 = arith.constant dense<0.000000e+00> : vector<8x128xf32>
    %175 = tpu.matmul %171, %3, %cst_42 {dimension_numbers = #tpu.dot_dimension_numbers<[1], [0], [0], [1], [0, 0, 1, 1], [], []>} : vector<8x32xf32>, vector<32x128xf32>, vector<8x128xf32> -> vector<8x128xf32>
    %176 = vector.extract_strided_slice %11 {offsets = [7, 0, 0], sizes = [1, 8, 128], strides = [1, 1, 1]} : vector<8x8x128xf32> to vector<1x8x128xf32>
    %177 = vector.shape_cast %176 : vector<1x8x128xf32> to vector<8x128xf32>
    %178 = arith.addf %175, %177 : vector<8x128xf32>
    %179 = vector.extract_strided_slice %178 {offsets = [0, 0], sizes = [8, 96], strides = [1, 1]} : vector<8x128xf32> to vector<8x96xf32>
    %180 = arith.negf %179 : vector<8x96xf32>
    %181 = math.exp %180 : vector<8x96xf32>
    %cst_43 = arith.constant 1.000000e+00 : f32
    %182 = vector.broadcast %cst_43 : f32 to vector<8x96xf32>
    %183 = arith.addf %182, %181 : vector<8x96xf32>
    %184 = arith.divf %182, %183 : vector<8x96xf32>
    %185 = vector.extract_strided_slice %184 {offsets = [0, 0], sizes = [8, 32], strides = [1, 1]} : vector<8x96xf32> to vector<8x32xf32>
    %186 = vector.extract_strided_slice %184 {offsets = [0, 32], sizes = [8, 32], strides = [1, 1]} : vector<8x96xf32> to vector<8x32xf32>
    %187 = vector.extract_strided_slice %184 {offsets = [0, 64], sizes = [8, 32], strides = [1, 1]} : vector<8x96xf32> to vector<8x32xf32>
    %188 = vector.extract_strided_slice %178 {offsets = [0, 96], sizes = [8, 32], strides = [1, 1]} : vector<8x128xf32> to vector<8x32xf32>
    %189 = math.tanh %188 : vector<8x32xf32>
    %190 = arith.mulf %186, %169 : vector<8x32xf32>
    %191 = arith.mulf %185, %189 : vector<8x32xf32>
    %192 = arith.addf %190, %191 : vector<8x32xf32>
    %193 = math.tanh %192 : vector<8x32xf32>
    %194 = arith.mulf %187, %193 : vector<8x32xf32>
    %c7 = arith.constant 7 : index
    %c0_44 = arith.constant 0 : index
    %c0_45 = arith.constant 0 : index
    %195 = vector.load %arg5[%c7, %c0_44, %c0_45] : memref<8x8x32xf32, #tpu.memory_space<vmem>>, vector<1x8x32xf32>
    %196 = vector.shape_cast %195 : vector<1x8x32xf32> to vector<8x32xf32>
    %197 = vector.shape_cast %194 : vector<8x32xf32> to vector<1x8x32xf32>
    tpu.vector_store %arg5[%c7, %c0_44, %c0_45], %197 {strides = array<i32>} : memref<8x8x32xf32, #tpu.memory_space<vmem>>, vector<1x8x32xf32>,
    %c1_46 = arith.constant 1 : index
    %c0_47 = arith.constant 0 : index
    %c0_48 = arith.constant 0 : index
    %198 = vector.load %arg1[%c1_46, %c0_47, %c0_48] : memref<2x32x128xf32, #tpu.memory_space<vmem>>, vector<1x32x128xf32>
    %199 = vector.shape_cast %198 : vector<1x32x128xf32> to vector<32x128xf32>
    %c1_49 = arith.constant 1 : index
    %c0_50 = arith.constant 0 : index
    %c0_51 = arith.constant 0 : index
    %200 = vector.load %arg2[%c1_49, %c0_50, %c0_51] : memref<2x32x128xf32, #tpu.memory_space<vmem>>, vector<1x32x128xf32>
    %201 = vector.shape_cast %200 : vector<1x32x128xf32> to vector<32x128xf32>
    %c1_52 = arith.constant 1 : index
    %c0_53 = arith.constant 0 : index
    %c0_54 = arith.constant 0 : index
    %202 = vector.load %arg3[%c1_52, %c0_53, %c0_54] : memref<2x1x128xf32, #tpu.memory_space<vmem>>, vector<1x1x128xf32>
    %203 = vector.shape_cast %202 : vector<1x1x128xf32> to vector<1x128xf32>
    %c0_55 = arith.constant 0 : index
    %c0_56 = arith.constant 0 : index
    %c0_57 = arith.constant 0 : index
    %204 = vector.load %arg5[%c0_55, %c0_56, %c0_57] : memref<8x8x32xf32, #tpu.memory_space<vmem>>, vector<8x8x32xf32>
    %205 = vector.shape_cast %204 : vector<8x8x32xf32> to vector<64x32xf32>
    %cst_58 = arith.constant dense<0.000000e+00> : vector<64x128xf32>
    %206 = tpu.matmul %205, %199, %cst_58 {dimension_numbers = #tpu.dot_dimension_numbers<[1], [0], [0], [1], [0, 0, 1, 1], [], []>} : vector<64x32xf32>, vector<32x128xf32>, vector<64x128xf32> -> vector<64x128xf32>
    %207 = vector.broadcast %203 : vector<1x128xf32> to vector<64x128xf32>
    %208 = arith.addf %206, %207 : vector<64x128xf32>
    %209 = vector.shape_cast %208 : vector<64x128xf32> to vector<8x8x128xf32>
    %cst_59 = arith.constant 0.000000e+00 : f32
    %210 = vector.broadcast %cst_59 : f32 to vector<8x32xf32>
    %cst_60 = arith.constant 0.000000e+00 : f32
    %211 = vector.broadcast %cst_60 : f32 to vector<8x32xf32>
    %cst_61 = arith.constant dense<0.000000e+00> : vector<8x128xf32>
    %212 = tpu.matmul %210, %201, %cst_61 {dimension_numbers = #tpu.dot_dimension_numbers<[1], [0], [0], [1], [0, 0, 1, 1], [], []>} : vector<8x32xf32>, vector<32x128xf32>, vector<8x128xf32> -> vector<8x128xf32>
    %213 = vector.extract_strided_slice %209 {offsets = [0, 0, 0], sizes = [1, 8, 128], strides = [1, 1, 1]} : vector<8x8x128xf32> to vector<1x8x128xf32>
    %214 = vector.shape_cast %213 : vector<1x8x128xf32> to vector<8x128xf32>
    %215 = arith.addf %212, %214 : vector<8x128xf32>
    %216 = vector.extract_strided_slice %215 {offsets = [0, 0], sizes = [8, 96], strides = [1, 1]} : vector<8x128xf32> to vector<8x96xf32>
    %217 = arith.negf %216 : vector<8x96xf32>
    %218 = math.exp %217 : vector<8x96xf32>
    %cst_62 = arith.constant 1.000000e+00 : f32
    %219 = vector.broadcast %cst_62 : f32 to vector<8x96xf32>
    %220 = arith.addf %219, %218 : vector<8x96xf32>
    %221 = arith.divf %219, %220 : vector<8x96xf32>
    %222 = vector.extract_strided_slice %221 {offsets = [0, 0], sizes = [8, 32], strides = [1, 1]} : vector<8x96xf32> to vector<8x32xf32>
    %223 = vector.extract_strided_slice %221 {offsets = [0, 32], sizes = [8, 32], strides = [1, 1]} : vector<8x96xf32> to vector<8x32xf32>
    %224 = vector.extract_strided_slice %221 {offsets = [0, 64], sizes = [8, 32], strides = [1, 1]} : vector<8x96xf32> to vector<8x32xf32>
    %225 = vector.extract_strided_slice %215 {offsets = [0, 96], sizes = [8, 32], strides = [1, 1]} : vector<8x128xf32> to vector<8x32xf32>
    %226 = math.tanh %225 : vector<8x32xf32>
    %227 = arith.mulf %223, %211 : vector<8x32xf32>
    %228 = arith.mulf %222, %226 : vector<8x32xf32>
    %229 = arith.addf %227, %228 : vector<8x32xf32>
    %230 = math.tanh %229 : vector<8x32xf32>
    %231 = arith.mulf %224, %230 : vector<8x32xf32>
    %c0_63 = arith.constant 0 : index
    %c0_64 = arith.constant 0 : index
    %c0_65 = arith.constant 0 : index
    %232 = vector.load %arg4[%c0_63, %c0_64, %c0_65] : memref<8x8x32xf32, #tpu.memory_space<vmem>>, vector<1x8x32xf32>
    %233 = vector.shape_cast %232 : vector<1x8x32xf32> to vector<8x32xf32>
    %234 = vector.shape_cast %231 : vector<8x32xf32> to vector<1x8x32xf32>
    tpu.vector_store %arg4[%c0_63, %c0_64, %c0_65], %234 {strides = array<i32>} : memref<8x8x32xf32, #tpu.memory_space<vmem>>, vector<1x8x32xf32>,
    %cst_66 = arith.constant dense<0.000000e+00> : vector<8x128xf32>
    %235 = tpu.matmul %231, %201, %cst_66 {dimension_numbers = #tpu.dot_dimension_numbers<[1], [0], [0], [1], [0, 0, 1, 1], [], []>} : vector<8x32xf32>, vector<32x128xf32>, vector<8x128xf32> -> vector<8x128xf32>
    %236 = vector.extract_strided_slice %209 {offsets = [1, 0, 0], sizes = [1, 8, 128], strides = [1, 1, 1]} : vector<8x8x128xf32> to vector<1x8x128xf32>
    %237 = vector.shape_cast %236 : vector<1x8x128xf32> to vector<8x128xf32>
    %238 = arith.addf %235, %237 : vector<8x128xf32>
    %239 = vector.extract_strided_slice %238 {offsets = [0, 0], sizes = [8, 96], strides = [1, 1]} : vector<8x128xf32> to vector<8x96xf32>
    %240 = arith.negf %239 : vector<8x96xf32>
    %241 = math.exp %240 : vector<8x96xf32>
    %cst_67 = arith.constant 1.000000e+00 : f32
    %242 = vector.broadcast %cst_67 : f32 to vector<8x96xf32>
    %243 = arith.addf %242, %241 : vector<8x96xf32>
    %244 = arith.divf %242, %243 : vector<8x96xf32>
    %245 = vector.extract_strided_slice %244 {offsets = [0, 0], sizes = [8, 32], strides = [1, 1]} : vector<8x96xf32> to vector<8x32xf32>
    %246 = vector.extract_strided_slice %244 {offsets = [0, 32], sizes = [8, 32], strides = [1, 1]} : vector<8x96xf32> to vector<8x32xf32>
    %247 = vector.extract_strided_slice %244 {offsets = [0, 64], sizes = [8, 32], strides = [1, 1]} : vector<8x96xf32> to vector<8x32xf32>
    %248 = vector.extract_strided_slice %238 {offsets = [0, 96], sizes = [8, 32], strides = [1, 1]} : vector<8x128xf32> to vector<8x32xf32>
    %249 = math.tanh %248 : vector<8x32xf32>
    %250 = arith.mulf %246, %229 : vector<8x32xf32>
    %251 = arith.mulf %245, %249 : vector<8x32xf32>
    %252 = arith.addf %250, %251 : vector<8x32xf32>
    %253 = math.tanh %252 : vector<8x32xf32>
    %254 = arith.mulf %247, %253 : vector<8x32xf32>
    %c1_68 = arith.constant 1 : index
    %c0_69 = arith.constant 0 : index
    %c0_70 = arith.constant 0 : index
    %255 = vector.load %arg4[%c1_68, %c0_69, %c0_70] : memref<8x8x32xf32, #tpu.memory_space<vmem>>, vector<1x8x32xf32>
    %256 = vector.shape_cast %255 : vector<1x8x32xf32> to vector<8x32xf32>
    %257 = vector.shape_cast %254 : vector<8x32xf32> to vector<1x8x32xf32>
    tpu.vector_store %arg4[%c1_68, %c0_69, %c0_70], %257 {strides = array<i32>} : memref<8x8x32xf32, #tpu.memory_space<vmem>>, vector<1x8x32xf32>,
    %cst_71 = arith.constant dense<0.000000e+00> : vector<8x128xf32>
    %258 = tpu.matmul %254, %201, %cst_71 {dimension_numbers = #tpu.dot_dimension_numbers<[1], [0], [0], [1], [0, 0, 1, 1], [], []>} : vector<8x32xf32>, vector<32x128xf32>, vector<8x128xf32> -> vector<8x128xf32>
    %259 = vector.extract_strided_slice %209 {offsets = [2, 0, 0], sizes = [1, 8, 128], strides = [1, 1, 1]} : vector<8x8x128xf32> to vector<1x8x128xf32>
    %260 = vector.shape_cast %259 : vector<1x8x128xf32> to vector<8x128xf32>
    %261 = arith.addf %258, %260 : vector<8x128xf32>
    %262 = vector.extract_strided_slice %261 {offsets = [0, 0], sizes = [8, 96], strides = [1, 1]} : vector<8x128xf32> to vector<8x96xf32>
    %263 = arith.negf %262 : vector<8x96xf32>
    %264 = math.exp %263 : vector<8x96xf32>
    %cst_72 = arith.constant 1.000000e+00 : f32
    %265 = vector.broadcast %cst_72 : f32 to vector<8x96xf32>
    %266 = arith.addf %265, %264 : vector<8x96xf32>
    %267 = arith.divf %265, %266 : vector<8x96xf32>
    %268 = vector.extract_strided_slice %267 {offsets = [0, 0], sizes = [8, 32], strides = [1, 1]} : vector<8x96xf32> to vector<8x32xf32>
    %269 = vector.extract_strided_slice %267 {offsets = [0, 32], sizes = [8, 32], strides = [1, 1]} : vector<8x96xf32> to vector<8x32xf32>
    %270 = vector.extract_strided_slice %267 {offsets = [0, 64], sizes = [8, 32], strides = [1, 1]} : vector<8x96xf32> to vector<8x32xf32>
    %271 = vector.extract_strided_slice %261 {offsets = [0, 96], sizes = [8, 32], strides = [1, 1]} : vector<8x128xf32> to vector<8x32xf32>
    %272 = math.tanh %271 : vector<8x32xf32>
    %273 = arith.mulf %269, %252 : vector<8x32xf32>
    %274 = arith.mulf %268, %272 : vector<8x32xf32>
    %275 = arith.addf %273, %274 : vector<8x32xf32>
    %276 = math.tanh %275 : vector<8x32xf32>
    %277 = arith.mulf %270, %276 : vector<8x32xf32>
    %c2_73 = arith.constant 2 : index
    %c0_74 = arith.constant 0 : index
    %c0_75 = arith.constant 0 : index
    %278 = vector.load %arg4[%c2_73, %c0_74, %c0_75] : memref<8x8x32xf32, #tpu.memory_space<vmem>>, vector<1x8x32xf32>
    %279 = vector.shape_cast %278 : vector<1x8x32xf32> to vector<8x32xf32>
    %280 = vector.shape_cast %277 : vector<8x32xf32> to vector<1x8x32xf32>
    tpu.vector_store %arg4[%c2_73, %c0_74, %c0_75], %280 {strides = array<i32>} : memref<8x8x32xf32, #tpu.memory_space<vmem>>, vector<1x8x32xf32>,
    %cst_76 = arith.constant dense<0.000000e+00> : vector<8x128xf32>
    %281 = tpu.matmul %277, %201, %cst_76 {dimension_numbers = #tpu.dot_dimension_numbers<[1], [0], [0], [1], [0, 0, 1, 1], [], []>} : vector<8x32xf32>, vector<32x128xf32>, vector<8x128xf32> -> vector<8x128xf32>
    %282 = vector.extract_strided_slice %209 {offsets = [3, 0, 0], sizes = [1, 8, 128], strides = [1, 1, 1]} : vector<8x8x128xf32> to vector<1x8x128xf32>
    %283 = vector.shape_cast %282 : vector<1x8x128xf32> to vector<8x128xf32>
    %284 = arith.addf %281, %283 : vector<8x128xf32>
    %285 = vector.extract_strided_slice %284 {offsets = [0, 0], sizes = [8, 96], strides = [1, 1]} : vector<8x128xf32> to vector<8x96xf32>
    %286 = arith.negf %285 : vector<8x96xf32>
    %287 = math.exp %286 : vector<8x96xf32>
    %cst_77 = arith.constant 1.000000e+00 : f32
    %288 = vector.broadcast %cst_77 : f32 to vector<8x96xf32>
    %289 = arith.addf %288, %287 : vector<8x96xf32>
    %290 = arith.divf %288, %289 : vector<8x96xf32>
    %291 = vector.extract_strided_slice %290 {offsets = [0, 0], sizes = [8, 32], strides = [1, 1]} : vector<8x96xf32> to vector<8x32xf32>
    %292 = vector.extract_strided_slice %290 {offsets = [0, 32], sizes = [8, 32], strides = [1, 1]} : vector<8x96xf32> to vector<8x32xf32>
    %293 = vector.extract_strided_slice %290 {offsets = [0, 64], sizes = [8, 32], strides = [1, 1]} : vector<8x96xf32> to vector<8x32xf32>
    %294 = vector.extract_strided_slice %284 {offsets = [0, 96], sizes = [8, 32], strides = [1, 1]} : vector<8x128xf32> to vector<8x32xf32>
    %295 = math.tanh %294 : vector<8x32xf32>
    %296 = arith.mulf %292, %275 : vector<8x32xf32>
    %297 = arith.mulf %291, %295 : vector<8x32xf32>
    %298 = arith.addf %296, %297 : vector<8x32xf32>
    %299 = math.tanh %298 : vector<8x32xf32>
    %300 = arith.mulf %293, %299 : vector<8x32xf32>
    %c3_78 = arith.constant 3 : index
    %c0_79 = arith.constant 0 : index
    %c0_80 = arith.constant 0 : index
    %301 = vector.load %arg4[%c3_78, %c0_79, %c0_80] : memref<8x8x32xf32, #tpu.memory_space<vmem>>, vector<1x8x32xf32>
    %302 = vector.shape_cast %301 : vector<1x8x32xf32> to vector<8x32xf32>
    %303 = vector.shape_cast %300 : vector<8x32xf32> to vector<1x8x32xf32>
    tpu.vector_store %arg4[%c3_78, %c0_79, %c0_80], %303 {strides = array<i32>} : memref<8x8x32xf32, #tpu.memory_space<vmem>>, vector<1x8x32xf32>,
    %cst_81 = arith.constant dense<0.000000e+00> : vector<8x128xf32>
    %304 = tpu.matmul %300, %201, %cst_81 {dimension_numbers = #tpu.dot_dimension_numbers<[1], [0], [0], [1], [0, 0, 1, 1], [], []>} : vector<8x32xf32>, vector<32x128xf32>, vector<8x128xf32> -> vector<8x128xf32>
    %305 = vector.extract_strided_slice %209 {offsets = [4, 0, 0], sizes = [1, 8, 128], strides = [1, 1, 1]} : vector<8x8x128xf32> to vector<1x8x128xf32>
    %306 = vector.shape_cast %305 : vector<1x8x128xf32> to vector<8x128xf32>
    %307 = arith.addf %304, %306 : vector<8x128xf32>
    %308 = vector.extract_strided_slice %307 {offsets = [0, 0], sizes = [8, 96], strides = [1, 1]} : vector<8x128xf32> to vector<8x96xf32>
    %309 = arith.negf %308 : vector<8x96xf32>
    %310 = math.exp %309 : vector<8x96xf32>
    %cst_82 = arith.constant 1.000000e+00 : f32
    %311 = vector.broadcast %cst_82 : f32 to vector<8x96xf32>
    %312 = arith.addf %311, %310 : vector<8x96xf32>
    %313 = arith.divf %311, %312 : vector<8x96xf32>
    %314 = vector.extract_strided_slice %313 {offsets = [0, 0], sizes = [8, 32], strides = [1, 1]} : vector<8x96xf32> to vector<8x32xf32>
    %315 = vector.extract_strided_slice %313 {offsets = [0, 32], sizes = [8, 32], strides = [1, 1]} : vector<8x96xf32> to vector<8x32xf32>
    %316 = vector.extract_strided_slice %313 {offsets = [0, 64], sizes = [8, 32], strides = [1, 1]} : vector<8x96xf32> to vector<8x32xf32>
    %317 = vector.extract_strided_slice %307 {offsets = [0, 96], sizes = [8, 32], strides = [1, 1]} : vector<8x128xf32> to vector<8x32xf32>
    %318 = math.tanh %317 : vector<8x32xf32>
    %319 = arith.mulf %315, %298 : vector<8x32xf32>
    %320 = arith.mulf %314, %318 : vector<8x32xf32>
    %321 = arith.addf %319, %320 : vector<8x32xf32>
    %322 = math.tanh %321 : vector<8x32xf32>
    %323 = arith.mulf %316, %322 : vector<8x32xf32>
    %c4_83 = arith.constant 4 : index
    %c0_84 = arith.constant 0 : index
    %c0_85 = arith.constant 0 : index
    %324 = vector.load %arg4[%c4_83, %c0_84, %c0_85] : memref<8x8x32xf32, #tpu.memory_space<vmem>>, vector<1x8x32xf32>
    %325 = vector.shape_cast %324 : vector<1x8x32xf32> to vector<8x32xf32>
    %326 = vector.shape_cast %323 : vector<8x32xf32> to vector<1x8x32xf32>
    tpu.vector_store %arg4[%c4_83, %c0_84, %c0_85], %326 {strides = array<i32>} : memref<8x8x32xf32, #tpu.memory_space<vmem>>, vector<1x8x32xf32>,
    %cst_86 = arith.constant dense<0.000000e+00> : vector<8x128xf32>
    %327 = tpu.matmul %323, %201, %cst_86 {dimension_numbers = #tpu.dot_dimension_numbers<[1], [0], [0], [1], [0, 0, 1, 1], [], []>} : vector<8x32xf32>, vector<32x128xf32>, vector<8x128xf32> -> vector<8x128xf32>
    %328 = vector.extract_strided_slice %209 {offsets = [5, 0, 0], sizes = [1, 8, 128], strides = [1, 1, 1]} : vector<8x8x128xf32> to vector<1x8x128xf32>
    %329 = vector.shape_cast %328 : vector<1x8x128xf32> to vector<8x128xf32>
    %330 = arith.addf %327, %329 : vector<8x128xf32>
    %331 = vector.extract_strided_slice %330 {offsets = [0, 0], sizes = [8, 96], strides = [1, 1]} : vector<8x128xf32> to vector<8x96xf32>
    %332 = arith.negf %331 : vector<8x96xf32>
    %333 = math.exp %332 : vector<8x96xf32>
    %cst_87 = arith.constant 1.000000e+00 : f32
    %334 = vector.broadcast %cst_87 : f32 to vector<8x96xf32>
    %335 = arith.addf %334, %333 : vector<8x96xf32>
    %336 = arith.divf %334, %335 : vector<8x96xf32>
    %337 = vector.extract_strided_slice %336 {offsets = [0, 0], sizes = [8, 32], strides = [1, 1]} : vector<8x96xf32> to vector<8x32xf32>
    %338 = vector.extract_strided_slice %336 {offsets = [0, 32], sizes = [8, 32], strides = [1, 1]} : vector<8x96xf32> to vector<8x32xf32>
    %339 = vector.extract_strided_slice %336 {offsets = [0, 64], sizes = [8, 32], strides = [1, 1]} : vector<8x96xf32> to vector<8x32xf32>
    %340 = vector.extract_strided_slice %330 {offsets = [0, 96], sizes = [8, 32], strides = [1, 1]} : vector<8x128xf32> to vector<8x32xf32>
    %341 = math.tanh %340 : vector<8x32xf32>
    %342 = arith.mulf %338, %321 : vector<8x32xf32>
    %343 = arith.mulf %337, %341 : vector<8x32xf32>
    %344 = arith.addf %342, %343 : vector<8x32xf32>
    %345 = math.tanh %344 : vector<8x32xf32>
    %346 = arith.mulf %339, %345 : vector<8x32xf32>
    %c5_88 = arith.constant 5 : index
    %c0_89 = arith.constant 0 : index
    %c0_90 = arith.constant 0 : index
    %347 = vector.load %arg4[%c5_88, %c0_89, %c0_90] : memref<8x8x32xf32, #tpu.memory_space<vmem>>, vector<1x8x32xf32>
    %348 = vector.shape_cast %347 : vector<1x8x32xf32> to vector<8x32xf32>
    %349 = vector.shape_cast %346 : vector<8x32xf32> to vector<1x8x32xf32>
    tpu.vector_store %arg4[%c5_88, %c0_89, %c0_90], %349 {strides = array<i32>} : memref<8x8x32xf32, #tpu.memory_space<vmem>>, vector<1x8x32xf32>,
    %cst_91 = arith.constant dense<0.000000e+00> : vector<8x128xf32>
    %350 = tpu.matmul %346, %201, %cst_91 {dimension_numbers = #tpu.dot_dimension_numbers<[1], [0], [0], [1], [0, 0, 1, 1], [], []>} : vector<8x32xf32>, vector<32x128xf32>, vector<8x128xf32> -> vector<8x128xf32>
    %351 = vector.extract_strided_slice %209 {offsets = [6, 0, 0], sizes = [1, 8, 128], strides = [1, 1, 1]} : vector<8x8x128xf32> to vector<1x8x128xf32>
    %352 = vector.shape_cast %351 : vector<1x8x128xf32> to vector<8x128xf32>
    %353 = arith.addf %350, %352 : vector<8x128xf32>
    %354 = vector.extract_strided_slice %353 {offsets = [0, 0], sizes = [8, 96], strides = [1, 1]} : vector<8x128xf32> to vector<8x96xf32>
    %355 = arith.negf %354 : vector<8x96xf32>
    %356 = math.exp %355 : vector<8x96xf32>
    %cst_92 = arith.constant 1.000000e+00 : f32
    %357 = vector.broadcast %cst_92 : f32 to vector<8x96xf32>
    %358 = arith.addf %357, %356 : vector<8x96xf32>
    %359 = arith.divf %357, %358 : vector<8x96xf32>
    %360 = vector.extract_strided_slice %359 {offsets = [0, 0], sizes = [8, 32], strides = [1, 1]} : vector<8x96xf32> to vector<8x32xf32>
    %361 = vector.extract_strided_slice %359 {offsets = [0, 32], sizes = [8, 32], strides = [1, 1]} : vector<8x96xf32> to vector<8x32xf32>
    %362 = vector.extract_strided_slice %359 {offsets = [0, 64], sizes = [8, 32], strides = [1, 1]} : vector<8x96xf32> to vector<8x32xf32>
    %363 = vector.extract_strided_slice %353 {offsets = [0, 96], sizes = [8, 32], strides = [1, 1]} : vector<8x128xf32> to vector<8x32xf32>
    %364 = math.tanh %363 : vector<8x32xf32>
    %365 = arith.mulf %361, %344 : vector<8x32xf32>
    %366 = arith.mulf %360, %364 : vector<8x32xf32>
    %367 = arith.addf %365, %366 : vector<8x32xf32>
    %368 = math.tanh %367 : vector<8x32xf32>
    %369 = arith.mulf %362, %368 : vector<8x32xf32>
    %c6_93 = arith.constant 6 : index
    %c0_94 = arith.constant 0 : index
    %c0_95 = arith.constant 0 : index
    %370 = vector.load %arg4[%c6_93, %c0_94, %c0_95] : memref<8x8x32xf32, #tpu.memory_space<vmem>>, vector<1x8x32xf32>
    %371 = vector.shape_cast %370 : vector<1x8x32xf32> to vector<8x32xf32>
    %372 = vector.shape_cast %369 : vector<8x32xf32> to vector<1x8x32xf32>
    tpu.vector_store %arg4[%c6_93, %c0_94, %c0_95], %372 {strides = array<i32>} : memref<8x8x32xf32, #tpu.memory_space<vmem>>, vector<1x8x32xf32>,
    %cst_96 = arith.constant dense<0.000000e+00> : vector<8x128xf32>
    %373 = tpu.matmul %369, %201, %cst_96 {dimension_numbers = #tpu.dot_dimension_numbers<[1], [0], [0], [1], [0, 0, 1, 1], [], []>} : vector<8x32xf32>, vector<32x128xf32>, vector<8x128xf32> -> vector<8x128xf32>
    %374 = vector.extract_strided_slice %209 {offsets = [7, 0, 0], sizes = [1, 8, 128], strides = [1, 1, 1]} : vector<8x8x128xf32> to vector<1x8x128xf32>
    %375 = vector.shape_cast %374 : vector<1x8x128xf32> to vector<8x128xf32>
    %376 = arith.addf %373, %375 : vector<8x128xf32>
    %377 = vector.extract_strided_slice %376 {offsets = [0, 0], sizes = [8, 96], strides = [1, 1]} : vector<8x128xf32> to vector<8x96xf32>
    %378 = arith.negf %377 : vector<8x96xf32>
    %379 = math.exp %378 : vector<8x96xf32>
    %cst_97 = arith.constant 1.000000e+00 : f32
    %380 = vector.broadcast %cst_97 : f32 to vector<8x96xf32>
    %381 = arith.addf %380, %379 : vector<8x96xf32>
    %382 = arith.divf %380, %381 : vector<8x96xf32>
    %383 = vector.extract_strided_slice %382 {offsets = [0, 0], sizes = [8, 32], strides = [1, 1]} : vector<8x96xf32> to vector<8x32xf32>
    %384 = vector.extract_strided_slice %382 {offsets = [0, 32], sizes = [8, 32], strides = [1, 1]} : vector<8x96xf32> to vector<8x32xf32>
    %385 = vector.extract_strided_slice %382 {offsets = [0, 64], sizes = [8, 32], strides = [1, 1]} : vector<8x96xf32> to vector<8x32xf32>
    %386 = vector.extract_strided_slice %376 {offsets = [0, 96], sizes = [8, 32], strides = [1, 1]} : vector<8x128xf32> to vector<8x32xf32>
    %387 = math.tanh %386 : vector<8x32xf32>
    %388 = arith.mulf %384, %367 : vector<8x32xf32>
    %389 = arith.mulf %383, %387 : vector<8x32xf32>
    %390 = arith.addf %388, %389 : vector<8x32xf32>
    %391 = math.tanh %390 : vector<8x32xf32>
    %392 = arith.mulf %385, %391 : vector<8x32xf32>
    %c7_98 = arith.constant 7 : index
    %c0_99 = arith.constant 0 : index
    %c0_100 = arith.constant 0 : index
    %393 = vector.load %arg4[%c7_98, %c0_99, %c0_100] : memref<8x8x32xf32, #tpu.memory_space<vmem>>, vector<1x8x32xf32>
    %394 = vector.shape_cast %393 : vector<1x8x32xf32> to vector<8x32xf32>
    %395 = vector.shape_cast %392 : vector<8x32xf32> to vector<1x8x32xf32>
    tpu.vector_store %arg4[%c7_98, %c0_99, %c0_100], %395 {strides = array<i32>} : memref<8x8x32xf32, #tpu.memory_space<vmem>>, vector<1x8x32xf32>,
    return
  }
}

</mosaic_0001>

<bundles_post_ra>
// kernel: tpu_custom_call.1
= control target key start
LH: loop header
LB: loop body
LE: loop exit
PB: predicated region body
PF: predicated region fallthrough
CT: control target
= control target key end

     0   :  { %9 = vsyncpa [#allocation4], 0  ;;  %s3011_s0 = inlined_call_operand.hbm [shape: f32[8,8,32], index: 0, kind: input, shape index: {}]   ;;  %s3012_s1 = inlined_call_operand.hbm [shape: f32[2,32,128], index: 1, kind: input, shape index: {}]   ;;  %s3013_s2 = inlined_call_operand.hbm [shape: f32[2,32,128], index: 2, kind: input, shape index: {}]   ;;  %s3014_s3 = inlined_call_operand.vmem [shape: f32[2,1,128], index: 3, kind: input, shape index: {}]   ;;  %s3015_s4 = inlined_call_operand.hbm [shape: f32[8,8,32], index: 4, kind: output, shape index: {}]  }
   0x1   :  { %10 = vsyncpa [#allocation7], 0 }
   0x2   :  { %11 = vsyncpa [#allocation5], 0  ;;  %s2607_s15 = smov [#allocation6]   ;;  %s2608_s17 = smov [#allocation3]  }
   0x3   :  { %s29_s16 = sshll.u32 %s2607_s15, 4  ;;  %s17_s18 = sshll.u32 %s2608_s17, 4  ;;  %s30_s16 = int_to_ptr.vmem [resolvable:$true] %s29_s16  ;;  %s18_s18 = int_to_ptr.vmem [resolvable:$true] %s17_s18 }
   0x4   :  { %s2529_s19 = scalar_lea.vmem %s30_s16, 1024  ;;  %p2534_p1 = scmp.lt.s32.totalorder %s30_s16, %s30_s16 }
   0x5   :  { %p2530_p0 = scmp.ne.s32.totalorder %s30_s16, %s2529_s19  ;;  %p2535_p2 = scmp.lt.s32.totalorder %s2529_s19, %s2529_s19 }
   0x7   :  { %p2536_p3 = por %p2535_p2, %p2534_p1 }
   0x9   :  { %p2537_p4 = pnand %p2536_p3, %p2530_p0 }
   0xb   :  { %2540 = shalt.err (!%p2537_p4)
}
   0xc   :  { %s2609_s20 = smov 128   ;;  %s2610_s21 = smov 8  }
   0xd   :  { %35 = dma.hbm_to_vmem [thread:$0]  %s3012_s1, 1024, %s30_s16, [#allocation7], %s2609_s20, %s2609_s20, %s2610_s21  }
   0xe   :  { %s2549_s24 = scalar_lea.vmem %s18_s18, 1024  ;;  %p2554_p6 = scmp.lt.s32.totalorder %s18_s18, %s18_s18 }
   0xf   :  { %p2550_p5 = scmp.ne.s32.totalorder %s18_s18, %s2549_s24  ;;  %p2555_p7 = scmp.lt.s32.totalorder %s2549_s24, %s2549_s24 }
  0x11   :  { %p2556_p8 = por %p2555_p7, %p2554_p6 }
  0x13   :  { %p2557_p9 = pnand %p2556_p8, %p2550_p5 }
  0x15   :  { %2560 = shalt.err (!%p2557_p9)
}
  0x16   :  { %23 = dma.hbm_to_vmem [thread:$0]  %s3011_s0, 1024, %s18_s18, [#allocation4], %s2609_s20, %s2609_s20, %s2610_s21  }
  0x17   :  { %s2611_s27 = smov [#allocation8]  }
  0x18   :  { %s41_s28 = sshll.u32 %s2611_s27, 4  ;;  %s42_s28 = int_to_ptr.vmem [resolvable:$true] %s41_s28 }
  0x19   :  { %s2569_s29 = scalar_lea.vmem %s42_s28, 1024  ;;  %p2574_p11 = scmp.lt.s32.totalorder %s42_s28, %s42_s28 }
  0x1a   :  { %p2570_p10 = scmp.ne.s32.totalorder %s42_s28, %s2569_s29  ;;  %p2575_p12 = scmp.lt.s32.totalorder %s2569_s29, %s2569_s29 }
  0x1c   :  { %p2576_p13 = por %p2575_p12, %p2574_p11 }
  0x1e   :  { %p2577_p0 = pnand %p2576_p13, %p2570_p10 }
  0x20   :  { %2580 = shalt.err (!%p2577_p0)
}
  0x21   :  { %47 = dma.hbm_to_vmem [thread:$0]  %s3013_s2, 1024, %s42_s28, [#allocation7], %s2609_s20, %s2609_s20, %s2610_s21  }
  0x22   :  { %2601 = dma.done.wait [#allocation4], 1024  }
  0x23   :  { %2602 = vsyncadd [#allocation4], 4294966272 }
  0x24   :  { %2603 = dma.done.wait [#allocation7], 2048  }
  0x25   :  { %2604 = vsyncadd [#allocation7], 4294965248  ;;  %v2612_v0 = vmov 0.0   ;;  %vm2613_vm0 = vmmov 0   ;;  %v62_v1 = vld [vmem:[#allocation6 + $0x18] sm:$0xff]  ;;  %v61_v2 = vld [vmem:[#allocation6 + $0x10] sm:$0xff] }
  0x26   :  { %2187 = vmatprep.subr.mxu1 %v2612_v0  ;;  %2195 = vmatprep.mubr.msk.f32.mxu1 %vm2613_vm0, %v2612_v0  ;;  %v2663_v3 = vld [vmem:[#allocation8 + $0x18] sm:$0xff]  ;;  %v2666_v4 = vld [vmem:[#allocation8 + $0x10] sm:$0xff]  ;;  %v60_v5 = vld [vmem:[#allocation6 + $0x8] sm:$0xff]  ;;  %vm82_vm1 = vcmask 261120   ;;  %s2614_s5 = smov 32   ;;  %s2615_s6 = smov 64  }
  0x27   :  { %2167 = vmatprep.subr.mxu0 %v62_v1  ;;  %2188 = vmatpush3.msra.mxu1 %v2663_v3  ;;  %v68_v6 = vld [vmem:[#allocation3] sm:$0xff]  ;;  %v2670_v7 = vld [vmem:[#allocation8 + $0x8] sm:$0xff]  ;;  %v70_v46 = vld [vmem:[#allocation3 + $0x10] sm:$0xff] }
  0x28   :  { %2168 = vmatpush3.msra.mxu0 %v62_v1  ;;  %2189 = vmatprep.subr.mxu1 %v2612_v0  ;;  %v59_v8 = vld [vmem:[#allocation6] sm:$0xff]  ;;  %v69_v10 = vld [vmem:[#allocation3 + $0x8] sm:$0xff]  ;;  %v71_v47 = vld [vmem:[#allocation3 + $0x18] sm:$0xff] }
  0x29   :  { %2169 = vmatprep.subr.mxu0 %v61_v2  ;;  %2190 = vmatpush3.msra.mxu1 %v2666_v4  ;;  %v2674_v9 = vld [vmem:[#allocation8] sm:$0xff]  ;;  %v73_v49 = vld [vmem:[#allocation3 + $0x28] sm:$0xff]  ;;  %v74_v50 = vld [vmem:[#allocation3 + $0x30] sm:$0xff] }
  0x2a   :  { %2170 = vmatpush3.msra.mxu0 %v61_v2  ;;  %2191 = vmatprep.subr.mxu1 %v2612_v0  ;;  %v2704_v13 = vld [vmem:[%s3014_s3] ss:$0 sm:$0xff]  ;;  %v75_v51 = vld [vmem:[#allocation3 + $0x38] sm:$0xff] }
  0x2b   :  { %2171 = vmatprep.subr.mxu0 %v60_v5  ;;  %2175 = vmatprep.mubr.msk.f32.mxu0 %vm82_vm1, %v68_v6  ;;  %v72_v48 = vld [vmem:[#allocation3 + $0x20] sm:$0xff] }
  0x2c   :  { %2172 = vmatpush3.msra.mxu0 %v60_v5  ;;  %2192 = vmatpush3.msra.mxu1 %v2670_v7 }
  0x2d   :  { %2173 = vmatprep.subr.mxu0 %v59_v8  ;;  %2193 = vmatprep.subr.mxu1 %v2612_v0 }
  0x2e   :  { %2174 = vmatpush3.msra.mxu0 %v59_v8  ;;  %2194 = vmatpush3.msra.mxu1 %v2674_v9 }
  0x2f   :  { %2176 = vmatmul.mubr.msk.f32.vlgmr.msra.gmra.mxu0 %vm82_vm1, %v69_v10  ;;  %2196 = vmatmul.mubr.f32.vlgmr.msra.gmra.mxu1 %v2612_v0 }
  0x30   :  { %2198 = vmatprep.subr.mxu1 %v2612_v0  ;;  %2206 = vmatprep.mubr.msk.f32.mxu1 %vm2613_vm0, %v2612_v0 }
  0x31   :  { %2199 = vmatpush3.msra.mxu1 %v2663_v3  ;;  %2209 = vmatprep.subr.mxu0 %v2612_v0 }
  0x32   :  { %2200 = vmatprep.subr.mxu1 %v2612_v0  ;;  %2210 = vmatpush3.msra.mxu0 %v2663_v3 }
  0x33   :  { %2201 = vmatpush3.msra.mxu1 %v2666_v4  ;;  %2211 = vmatprep.subr.mxu0 %v2612_v0 }
  0x34   :  { %2202 = vmatprep.subr.mxu1 %v2612_v0  ;;  %2212 = vmatpush3.msra.mxu0 %v2666_v4 }
  0x35   :  { %2203 = vmatpush3.msra.mxu1 %v2670_v7  ;;  %2213 = vmatprep.subr.mxu0 %v2612_v0 }
  0x36   :  { %2204 = vmatprep.subr.mxu1 %v2612_v0  ;;  %2214 = vmatpush3.msra.mxu0 %v2670_v7 }
  0x37   :  { %2205 = vmatpush3.msra.mxu1 %v2674_v9  ;;  %2215 = vmatprep.subr.mxu0 %v2612_v0 }
  0x38   :  { %2216 = vmatpush3.msra.mxu0 %v2674_v9  ;;  %2220 = vmatprep.subr.mxu1 %v2612_v0 }
  0x39   :  { %2231 = vmatprep.subr.mxu0 %v2612_v0  ;;  %2178 = vmatprep.mubr.msk.f32.mxu0 %vm82_vm1, %v70_v46 }
  0x3a   :  { %2179 = vmatmul.mubr.msk.f32.gmra.mxu0 %vm82_vm1, %v71_v47 }
  0x3b   :  { %2181 = vmatprep.mubr.msk.f32.mxu0 %vm82_vm1, %v72_v48 }
  0x3e   :  { %2182 = vmatmul.mubr.msk.f32.gmra.mxu0 %vm82_vm1, %v73_v49 }
  0x3f   :  { %2184 = vmatprep.mubr.msk.f32.mxu0 %vm82_vm1, %v74_v50 }
  0x42   :  { %2185 = vmatmul.mubr.msk.f32.gmra.mxu0 %vm82_vm1, %v75_v51 }
  0x43   :  { %2217 = vmatprep.mubr.msk.f32.mxu0 %vm2613_vm0, %v2612_v0 }
  0xef   :  { %v2177_v11 = vpop.f32.mrf.mxu0  ;;  %v281_v12 = vpop.f32.mrf.mxu1 }
  0xf0   :  { %v179_v32 = vadd.f32 %v2177_v11, %v2704_v13 }
  0xf1   :  { %v173_v14 = vpop.f32.mrf.mxu0  ;;  %v2197_v15 = vpop.f32.mrf.mxu1 }
  0xf2   :  { %v174_v16 = vadd.f32 %v2704_v13, %v173_v14 }
  0xf4   :  { %v282_v17 = vadd.f32 %v281_v12, %v174_v16 }
  0xf6   :  { %2393 = vtanh.f32 %v282_v17  ;;  %v2023_v19 = vmul.f32 -1.442695, %v282_v17 }
  0xf8   :  { %2395 = vpow2.f32 %v2023_v19 }
  0xfa   :  { %v2180_v56 = vpop.f32.mrf.mxu0 }
  0xfc   :  { %v183_v57 = vpop.f32.mrf.mxu0 }
  0xfd   :  { %v184_v62 = vadd.f32 %v2704_v13, %v183_v57 }
  0xfe   :  { %v2748_v58 = vpop.f32.mrf.mxu0 }
 0x100   :  { %v2750_v59 = vpop.f32.mrf.mxu0 }
 0x102   :  { %v2752_v60 = vpop.f32.mrf.mxu0 }
 0x103   :  { %v2394_v18 = vpop.eup %2393 }
 0x104   :  { %294 = vrot.lane.b32.xlu0 %v2394_v18, %s2614_s5  ;;  %v2754_v61 = vpop.f32.mrf.mxu0 }
 0x105   :  { %v2396_v20 = vpop.eup %2395 }
 0x106   :  { %v288_v21 = vadd.f32 1.0, %v2396_v20 }
 0x108   :  { %2397 = vrcp.f32 %v288_v21 }
 0x115   :  { %v2398_v22 = vpop.eup %2397 }
 0x116   :  { %v292_v25 = vmul.f32 0.0, %v2398_v22 }
 0x176   :  { %v295_v23 = vpop.permute.xlu0 %294 }
 0x177   :  { %v297_v24 = vmul.f32 %v2398_v22, %v295_v23 }
 0x179   :  { %299 = vrot.lane.b32.xlu0 %v297_v24, %s2614_s5 }
 0x1eb   :  { %v300_v26 = vpop.permute.xlu0 %299 }
 0x1ec   :  { %v302_v27 = vadd.f32 %v300_v26, %v292_v25 }
 0x1ee   :  { %2399 = vtanh.f32 %v302_v27 }
 0x1fb   :  { %v2400_v28 = vpop.eup %2399 }
 0x1fc   :  { %305 = vrot.lane.b32.xlu1 %v2400_v28, %s2614_s5 }
 0x26e   :  { %v306_v29 = vpop.permute.xlu1 %305 }
 0x26f   :  { %v308_v30 = vmul.f32 %v2398_v22, %v306_v29  ;;  %v189_v22 = vadd.f32 %v2180_v56, %v2704_v13 }
 0x271   :  { %310 = vrot.lane.b32.xlu1 %v308_v30, %s2615_s6 }
 0x2e3   :  { %v311_v31 = vpop.permute.xlu1 %310 }
 0x2e4   :  { %313 = vst.msk [vmem:[#allocation2] sm:$0xff] %vm82_vm1, %v311_v31  ;;  %2207 = vmatmul.mubr.msk.f32.vlgmr.msra.gmra.mxu1 %vm82_vm1, %v311_v31 }
 0x2e5   :  { %2221 = vmatpush3.msra.mxu1 %v2663_v3  ;;  %2228 = vmatprep.mubr.msk.f32.mxu1 %vm2613_vm0, %v2612_v0 }
 0x2e6   :  { %2222 = vmatprep.subr.mxu1 %v2612_v0 }
 0x2e7   :  { %2223 = vmatpush3.msra.mxu1 %v2666_v4 }
 0x2e8   :  { %2224 = vmatprep.subr.mxu1 %v2612_v0 }
 0x2e9   :  { %2225 = vmatpush3.msra.mxu1 %v2670_v7 }
 0x2ea   :  { %2226 = vmatprep.subr.mxu1 %v2612_v0 }
 0x2eb   :  { %2227 = vmatpush3.msra.mxu1 %v2674_v9 }
 0x2ec   :  { %2242 = vmatprep.subr.mxu1 %v2612_v0 }
 0x3a4   :  { %v382_v33 = vpop.f32.mrf.mxu1 }
 0x3a5   :  { %v383_v34 = vadd.f32 %v382_v33, %v179_v32 }
 0x3a6   :  { %v2208_v35 = vpop.f32.mrf.mxu1 }
 0x3a7   :  { %2401 = vtanh.f32 %v383_v34  ;;  %v2025_v37 = vmul.f32 -1.442695, %v383_v34 }
 0x3a9   :  { %2403 = vpow2.f32 %v2025_v37 }
 0x3b4   :  { %v2402_v36 = vpop.eup %2401 }
 0x3b5   :  { %395 = vrot.lane.b32.xlu0 %v2402_v36, %s2614_s5 }
 0x3b6   :  { %v2404_v38 = vpop.eup %2403 }
 0x3b7   :  { %v389_v39 = vadd.f32 1.0, %v2404_v38 }
 0x3b9   :  { %2405 = vrcp.f32 %v389_v39 }
 0x3c6   :  { %v2406_v40 = vpop.eup %2405 }
 0x3c7   :  { %v393_v43 = vmul.f32 %v2406_v40, %v302_v27 }
 0x427   :  { %v396_v41 = vpop.permute.xlu0 %395 }
 0x428   :  { %v398_v42 = vmul.f32 %v2406_v40, %v396_v41 }
 0x42a   :  { %400 = vrot.lane.b32.xlu1 %v398_v42, %s2614_s5 }
 0x49c   :  { %v401_v44 = vpop.permute.xlu1 %400 }
 0x49d   :  { %v403_v45 = vadd.f32 %v401_v44, %v393_v43 }
 0x49f   :  { %2407 = vtanh.f32 %v403_v45 }
 0x4ac   :  { %v2408_v52 = vpop.eup %2407 }
 0x4ad   :  { %406 = vrot.lane.b32.xlu0 %v2408_v52, %s2614_s5 }
 0x51f   :  { %v407_v53 = vpop.permute.xlu0 %406 }
 0x520   :  { %v409_v54 = vmul.f32 %v2406_v40, %v407_v53  ;;  %v194_v40 = vadd.f32 %v2704_v13, %v2750_v59 }
 0x522   :  { %411 = vrot.lane.b32.xlu1 %v409_v54, %s2615_s6 }
 0x594   :  { %v412_v55 = vpop.permute.xlu1 %411 }
 0x595   :  { %415 = vst.msk [vmem:[#allocation2 + $0x8] sm:$0xff] %vm82_vm1, %v412_v55  ;;  %2218 = vmatmul.mubr.msk.f32.vlgmr.msra.gmra.mxu0 %vm82_vm1, %v412_v55 }
 0x596   :  { %2232 = vmatpush3.msra.mxu0 %v2663_v3  ;;  %2239 = vmatprep.mubr.msk.f32.mxu0 %vm2613_vm0, %v2612_v0 }
 0x597   :  { %2233 = vmatprep.subr.mxu0 %v2612_v0 }
 0x598   :  { %2234 = vmatpush3.msra.mxu0 %v2666_v4 }
 0x599   :  { %2235 = vmatprep.subr.mxu0 %v2612_v0 }
 0x59a   :  { %2236 = vmatpush3.msra.mxu0 %v2670_v7 }
 0x59b   :  { %2237 = vmatprep.subr.mxu0 %v2612_v0 }
 0x59c   :  { %2238 = vmatpush3.msra.mxu0 %v2674_v9 }
 0x59d   :  { %2253 = vmatprep.subr.mxu0 %v2612_v0 }
 0x655   :  { %v484_v63 = vpop.f32.mrf.mxu0 }
 0x656   :  { %v485_v1 = vadd.f32 %v484_v63, %v184_v62 }
 0x657   :  { %v2219_v2 = vpop.f32.mrf.mxu0 }
 0x658   :  { %2409 = vtanh.f32 %v485_v1  ;;  %v2027_v6 = vmul.f32 -1.442695, %v485_v1 }
 0x65a   :  { %2411 = vpow2.f32 %v2027_v6 }
 0x665   :  { %v2410_v5 = vpop.eup %2409 }
 0x666   :  { %497 = vrot.lane.b32.xlu0 %v2410_v5, %s2614_s5 }
 0x667   :  { %v2412_v8 = vpop.eup %2411 }
 0x668   :  { %v491_v10 = vadd.f32 1.0, %v2412_v8 }
 0x66a   :  { %2413 = vrcp.f32 %v491_v10 }
 0x677   :  { %v2414_v11 = vpop.eup %2413 }
 0x678   :  { %v495_v15 = vmul.f32 %v2414_v11, %v403_v45 }
 0x6d8   :  { %v498_v12 = vpop.permute.xlu0 %497 }
 0x6d9   :  { %v500_v14 = vmul.f32 %v2414_v11, %v498_v12 }
 0x6db   :  { %502 = vrot.lane.b32.xlu1 %v500_v14, %s2614_s5 }
 0x74d   :  { %v503_v16 = vpop.permute.xlu1 %502 }
 0x74e   :  { %v505_v17 = vadd.f32 %v503_v16, %v495_v15 }
 0x750   :  { %2415 = vtanh.f32 %v505_v17 }
 0x75d   :  { %v2416_v18 = vpop.eup %2415 }
 0x75e   :  { %508 = vrot.lane.b32.xlu0 %v2416_v18, %s2614_s5  ;;  %v1040_v18 = vld [vmem:[#allocation2] sm:$0xff] }
 0x7d0   :  { %v509_v19 = vpop.permute.xlu0 %508 }
 0x7d1   :  { %v511_v20 = vmul.f32 %v2414_v11, %v509_v19  ;;  %v1032_v11 = vld [vmem:[#allocation6 + $0x38] sm:$0xff]  ;;  %v1030_v19 = vld [vmem:[#allocation6 + $0x28] sm:$0xff] }
 0x7d3   :  { %513 = vrot.lane.b32.xlu1 %v511_v20, %s2615_s6  ;;  %v1029_v20 = vld [vmem:[#allocation6 + $0x20] sm:$0xff] }
 0x845   :  { %v514_v21 = vpop.permute.xlu1 %513 }
 0x846   :  { %517 = vst.msk [vmem:[#allocation2 + $0x10] sm:$0xff] %vm82_vm1, %v514_v21  ;;  %2229 = vmatmul.mubr.msk.f32.vlgmr.msra.gmra.mxu1 %vm82_vm1, %v514_v21  ;;  %v1041_v21 = vld [vmem:[#allocation2 + $0x8] sm:$0xff] }
 0x847   :  { %2243 = vmatpush3.msra.mxu1 %v2663_v3  ;;  %2250 = vmatprep.mubr.msk.f32.mxu1 %vm2613_vm0, %v2612_v0 }
 0x848   :  { %2244 = vmatprep.subr.mxu1 %v2612_v0 }
 0x849   :  { %2245 = vmatpush3.msra.mxu1 %v2666_v4 }
 0x84a   :  { %2246 = vmatprep.subr.mxu1 %v2612_v0 }
 0x84b   :  { %2247 = vmatpush3.msra.mxu1 %v2670_v7 }
 0x84c   :  { %2248 = vmatprep.subr.mxu1 %v2612_v0 }
 0x84d   :  { %2249 = vmatpush3.msra.mxu1 %v2674_v9 }
 0x84e   :  { %2264 = vmatprep.subr.mxu1 %v2612_v0 }
 0x906   :  { %v586_v23 = vpop.f32.mrf.mxu1 }
 0x907   :  { %v587_v24 = vadd.f32 %v586_v23, %v189_v22  ;;  %v1042_v22 = vld [vmem:[#allocation2 + $0x10] sm:$0xff] }
 0x908   :  { %v2230_v25 = vpop.f32.mrf.mxu1 }
 0x909   :  { %2417 = vtanh.f32 %v587_v24  ;;  %v2029_v27 = vmul.f32 -1.442695, %v587_v24 }
 0x90b   :  { %2419 = vpow2.f32 %v2029_v27 }
 0x916   :  { %v2418_v26 = vpop.eup %2417 }
 0x917   :  { %599 = vrot.lane.b32.xlu0 %v2418_v26, %s2614_s5  ;;  %v204_v26 = vadd.f32 %v2704_v13, %v2754_v61 }
 0x918   :  { %v2420_v28 = vpop.eup %2419 }
 0x919   :  { %v593_v29 = vadd.f32 1.0, %v2420_v28 }
 0x91b   :  { %2421 = vrcp.f32 %v593_v29 }
 0x928   :  { %v2422_v30 = vpop.eup %2421 }
 0x929   :  { %v597_v33 = vmul.f32 %v2422_v30, %v505_v17  ;;  %v1031_v17 = vld [vmem:[#allocation6 + $0x30] sm:$0xff] }
 0x989   :  { %v600_v31 = vpop.permute.xlu0 %599 }
 0x98a   :  { %v602_v32 = vmul.f32 %v2422_v30, %v600_v31 }
 0x98c   :  { %604 = vrot.lane.b32.xlu1 %v602_v32, %s2614_s5 }
 0x9fe   :  { %v605_v34 = vpop.permute.xlu1 %604 }
 0x9ff   :  { %v607_v35 = vadd.f32 %v605_v34, %v597_v33 }
 0xa01   :  { %2423 = vtanh.f32 %v607_v35 }
 0xa0e   :  { %v2424_v36 = vpop.eup %2423 }
 0xa0f   :  { %610 = vrot.lane.b32.xlu0 %v2424_v36, %s2614_s5 }
 0xa81   :  { %v611_v37 = vpop.permute.xlu0 %610 }
 0xa82   :  { %v613_v38 = vmul.f32 %v2422_v30, %v611_v37 }
 0xa84   :  { %615 = vrot.lane.b32.xlu1 %v613_v38, %s2615_s6 }
 0xaf6   :  { %v616_v39 = vpop.permute.xlu1 %615 }
 0xaf7   :  { %619 = vst.msk [vmem:[#allocation2 + $0x18] sm:$0xff] %vm82_vm1, %v616_v39  ;;  %2240 = vmatmul.mubr.msk.f32.vlgmr.msra.gmra.mxu0 %vm82_vm1, %v616_v39 }
 0xaf8   :  { %2254 = vmatpush3.msra.mxu0 %v2663_v3  ;;  %2261 = vmatprep.mubr.msk.f32.mxu0 %vm2613_vm0, %v2612_v0 }
 0xaf9   :  { %2255 = vmatprep.subr.mxu0 %v2612_v0 }
 0xafa   :  { %2256 = vmatpush3.msra.mxu0 %v2666_v4 }
 0xafb   :  { %2257 = vmatprep.subr.mxu0 %v2612_v0 }
 0xafc   :  { %2258 = vmatpush3.msra.mxu0 %v2670_v7 }
 0xafd   :  { %2259 = vmatprep.subr.mxu0 %v2612_v0 }
 0xafe   :  { %2260 = vmatpush3.msra.mxu0 %v2674_v9  ;;  %v1043_v23 = vld [vmem:[#allocation2 + $0x18] sm:$0xff] }
 0xaff   :  { %2275 = vmatprep.subr.mxu0 %v1032_v11 }
 0xbb7   :  { %v688_v41 = vpop.f32.mrf.mxu0 }
 0xbb8   :  { %v689_v42 = vadd.f32 %v688_v41, %v194_v40  ;;  %v2830_v40 = vld [vmem:[#allocation8 + $0x38] sm:$0xff]  ;;  %v2833_v41 = vld [vmem:[#allocation8 + $0x30] sm:$0xff] }
 0xbb9   :  { %v2241_v43 = vpop.f32.mrf.mxu0 }
 0xbba   :  { %2425 = vtanh.f32 %v689_v42  ;;  %v2031_v45 = vmul.f32 -1.442695, %v689_v42  ;;  %v2837_v42 = vld [vmem:[#allocation8 + $0x28] sm:$0xff]  ;;  %v2841_v43 = vld [vmem:[#allocation8 + $0x20] sm:$0xff] }
 0xbbc   :  { %2427 = vpow2.f32 %v2031_v45 }
 0xbc7   :  { %v2426_v44 = vpop.eup %2425 }
 0xbc8   :  { %701 = vrot.lane.b32.xlu0 %v2426_v44, %s2614_s5 }
 0xbc9   :  { %v2428_v46 = vpop.eup %2427 }
 0xbca   :  { %v695_v47 = vadd.f32 1.0, %v2428_v46 }
 0xbcc   :  { %2429 = vrcp.f32 %v695_v47 }
 0xbd9   :  { %v2430_v48 = vpop.eup %2429 }
 0xbda   :  { %v699_v51 = vmul.f32 %v2430_v48, %v607_v35 }
 0xc3a   :  { %v702_v49 = vpop.permute.xlu0 %701 }
 0xc3b   :  { %v704_v50 = vmul.f32 %v2430_v48, %v702_v49 }
 0xc3d   :  { %706 = vrot.lane.b32.xlu1 %v704_v50, %s2614_s5 }
 0xcaf   :  { %v707_v52 = vpop.permute.xlu1 %706 }
 0xcb0   :  { %v709_v53 = vadd.f32 %v707_v52, %v699_v51 }
 0xcb2   :  { %2431 = vtanh.f32 %v709_v53 }
 0xcbf   :  { %v2432_v54 = vpop.eup %2431 }
 0xcc0   :  { %712 = vrot.lane.b32.xlu0 %v2432_v54, %s2614_s5  ;;  %v2878_v54 = vld [vmem:[%s3014_s3 + $0x1] ss:$0 sm:$0xff]  ;;  %s2616_s3 = smov [#allocation9]  }
 0xcc1   :  { %s2001_s9 = sshll.u32 %s2616_s3, 4  ;;  %s2002_s9 = int_to_ptr.vmem [resolvable:$true] %s2001_s9 }
 0xcc2   :  { %s2581_s10 = scalar_lea.vmem %s2002_s9, 1024  ;;  %p2586_p2 = scmp.lt.s32.totalorder %s2002_s9, %s2002_s9 }
 0xcc3   :  { %p2582_p1 = scmp.ne.s32.totalorder %s2002_s9, %s2581_s10  ;;  %p2587_p3 = scmp.lt.s32.totalorder %s2581_s10, %s2581_s10 }
 0xcc5   :  { %p2588_p4 = por %p2587_p3, %p2586_p2 }
 0xcc7   :  { %p2589_p5 = pnand %p2588_p4, %p2582_p1 }
 0xd32   :  { %v713_v55 = vpop.permute.xlu0 %712 }
 0xd33   :  { %v715_v56 = vmul.f32 %v2430_v48, %v713_v55  ;;  %v209_v48 = vadd.f32 %v2752_v60, %v2704_v13 }
 0xd35   :  { %717 = vrot.lane.b32.xlu1 %v715_v56, %s2615_s6 }
 0xda7   :  { %v718_v57 = vpop.permute.xlu1 %717 }
 0xda8   :  { %721 = vst.msk [vmem:[#allocation2 + $0x20] sm:$0xff] %vm82_vm1, %v718_v57  ;;  %2251 = vmatmul.mubr.msk.f32.vlgmr.msra.gmra.mxu1 %vm82_vm1, %v718_v57 }
 0xda9   :  { %2265 = vmatpush3.msra.mxu1 %v2663_v3  ;;  %2272 = vmatprep.mubr.msk.f32.mxu1 %vm2613_vm0, %v2612_v0  ;;  %v199_v3 = vadd.f32 %v2748_v58, %v2704_v13 }
 0xdaa   :  { %2266 = vmatprep.subr.mxu1 %v2612_v0 }
 0xdab   :  { %2267 = vmatpush3.msra.mxu1 %v2666_v4 }
 0xdac   :  { %2268 = vmatprep.subr.mxu1 %v2612_v0 }
 0xdad   :  { %2269 = vmatpush3.msra.mxu1 %v2670_v7 }
 0xdae   :  { %2270 = vmatprep.subr.mxu1 %v2612_v0 }
 0xdaf   :  { %2271 = vmatpush3.msra.mxu1 %v2674_v9  ;;  %v1044_v24 = vld [vmem:[#allocation2 + $0x20] sm:$0xff] }
 0xdb0   :  { %2295 = vmatprep.subr.mxu1 %v2612_v0 }
 0xe68   :  { %v790_v59 = vpop.f32.mrf.mxu1 }
 0xe69   :  { %v791_v62 = vadd.f32 %v790_v59, %v199_v3 }
 0xe6a   :  { %v2252_v63 = vpop.f32.mrf.mxu1 }
 0xe6b   :  { %2433 = vtanh.f32 %v791_v62  ;;  %v2033_v4 = vmul.f32 -1.442695, %v791_v62 }
 0xe6d   :  { %2435 = vpow2.f32 %v2033_v4 }
 0xe78   :  { %v2434_v1 = vpop.eup %2433 }
 0xe79   :  { %803 = vrot.lane.b32.xlu0 %v2434_v1, %s2614_s5 }
 0xe7a   :  { %v2436_v2 = vpop.eup %2435 }
 0xe7b   :  { %v797_v7 = vadd.f32 1.0, %v2436_v2 }
 0xe7d   :  { %2437 = vrcp.f32 %v797_v7 }
 0xe8a   :  { %v2438_v5 = vpop.eup %2437 }
 0xe8b   :  { %v801_v8 = vmul.f32 %v2438_v5, %v709_v53 }
 0xeeb   :  { %v804_v6 = vpop.permute.xlu0 %803 }
 0xeec   :  { %v806_v9 = vmul.f32 %v2438_v5, %v804_v6 }
 0xeee   :  { %808 = vrot.lane.b32.xlu1 %v806_v9, %s2614_s5 }
 0xf60   :  { %v809_v10 = vpop.permute.xlu1 %808 }
 0xf61   :  { %v811_v58 = vadd.f32 %v809_v10, %v801_v8 }
 0xf63   :  { %2439 = vtanh.f32 %v811_v58 }
 0xf70   :  { %v2440_v12 = vpop.eup %2439 }
 0xf71   :  { %814 = vrot.lane.b32.xlu0 %v2440_v12, %s2614_s5 }
 0xfe3   :  { %v815_v14 = vpop.permute.xlu0 %814 }
 0xfe4   :  { %v817_v15 = vmul.f32 %v2438_v5, %v815_v14 }
 0xfe6   :  { %819 = vrot.lane.b32.xlu1 %v817_v15, %s2615_s6 }
0x1058   :  { %v820_v16 = vpop.permute.xlu1 %819 }
0x1059   :  { %823 = vst.msk [vmem:[#allocation2 + $0x28] sm:$0xff] %vm82_vm1, %v820_v16  ;;  %2262 = vmatmul.mubr.msk.f32.vlgmr.msra.gmra.mxu0 %vm82_vm1, %v820_v16 }
0x105a   :  { %2276 = vmatpush3.msra.mxu0 %v1032_v11  ;;  %2283 = vmatprep.mubr.msk.f32.mxu0 %vm82_vm1, %v1040_v18 }
0x105b   :  { %2277 = vmatprep.subr.mxu0 %v1031_v17 }
0x105c   :  { %2278 = vmatpush3.msra.mxu0 %v1031_v17 }
0x105d   :  { %2279 = vmatprep.subr.mxu0 %v1030_v19 }
0x105e   :  { %2280 = vmatpush3.msra.mxu0 %v1030_v19 }
0x105f   :  { %2281 = vmatprep.subr.mxu0 %v1029_v20 }
0x1060   :  { %2282 = vmatpush3.msra.mxu0 %v1029_v20  ;;  %v1045_v25 = vld [vmem:[#allocation2 + $0x28] sm:$0xff] }
0x1061   :  { %2284 = vmatmul.mubr.msk.f32.vlgmr.msra.gmra.mxu0 %vm82_vm1, %v1041_v21  ;;  %2317 = vmatprep.subr.mxu0 %v2612_v0 }
0x1062   :  { %2286 = vmatprep.mubr.msk.f32.mxu0 %vm82_vm1, %v1042_v22  ;;  %2318 = vmatpush3.msra.mxu0 %v2830_v40 }
0x1063   :  { %2319 = vmatprep.subr.mxu0 %v2612_v0 }
0x1064   :  { %2320 = vmatpush3.msra.mxu0 %v2833_v41 }
0x1065   :  { %2287 = vmatmul.mubr.msk.f32.gmra.mxu0 %vm82_vm1, %v1043_v23  ;;  %2321 = vmatprep.subr.mxu0 %v2612_v0 }
0x1066   :  { %2289 = vmatprep.mubr.msk.f32.mxu0 %vm82_vm1, %v1044_v24  ;;  %2322 = vmatpush3.msra.mxu0 %v2837_v42 }
0x1067   :  { %2323 = vmatprep.subr.mxu0 %v2612_v0 }
0x1068   :  { %2324 = vmatpush3.msra.mxu0 %v2841_v43 }
0x1069   :  { %2290 = vmatmul.mubr.msk.f32.gmra.mxu0 %vm82_vm1, %v1045_v25  ;;  %2339 = vmatprep.subr.mxu0 %v2612_v0 }
0x1119   :  { %v892_v27 = vpop.f32.mrf.mxu0 }
0x111a   :  { %v893_v28 = vadd.f32 %v892_v27, %v204_v26 }
0x111b   :  { %v2263_v29 = vpop.f32.mrf.mxu0 }
0x111c   :  { %2441 = vtanh.f32 %v893_v28  ;;  %v2035_v31 = vmul.f32 -1.442695, %v893_v28 }
0x111e   :  { %2443 = vpow2.f32 %v2035_v31 }
0x1121   :  { %v2873_v49 = vpop.f32.mrf.mxu0 }
0x1122   :  { %v1150_v24 = vadd.f32 %v2873_v49, %v2878_v54 }
0x1123   :  { %v1144_v53 = vpop.f32.mrf.mxu0 }
0x1124   :  { %v1145_v55 = vadd.f32 %v2878_v54, %v1144_v53 }
0x1129   :  { %v2442_v30 = vpop.eup %2441 }
0x112a   :  { %905 = vrot.lane.b32.xlu0 %v2442_v30, %s2614_s5 }
0x112b   :  { %v2444_v32 = vpop.eup %2443 }
0x112c   :  { %v899_v33 = vadd.f32 1.0, %v2444_v32 }
0x112e   :  { %2445 = vrcp.f32 %v899_v33 }
0x113b   :  { %v2446_v34 = vpop.eup %2445 }
0x113c   :  { %v903_v37 = vmul.f32 %v2446_v34, %v811_v58 }
0x119c   :  { %v906_v35 = vpop.permute.xlu0 %905 }
0x119d   :  { %v908_v36 = vmul.f32 %v2446_v34, %v906_v35 }
0x119f   :  { %910 = vrot.lane.b32.xlu1 %v908_v36, %s2614_s5 }
0x1211   :  { %v911_v38 = vpop.permute.xlu1 %910 }
0x1212   :  { %v2826_v61 = vadd.f32 %v911_v38, %v903_v37 }
0x1214   :  { %2447 = vtanh.f32 %v2826_v61 }
0x1221   :  { %v2448_v39 = vpop.eup %2447 }
0x1222   :  { %916 = vrot.lane.b32.xlu0 %v2448_v39, %s2614_s5 }
0x1294   :  { %v917_v44 = vpop.permute.xlu0 %916 }
0x1295   :  { %v919_v45 = vmul.f32 %v2446_v34, %v917_v44 }
0x1297   :  { %921 = vrot.lane.b32.xlu1 %v919_v45, %s2615_s6 }
0x1309   :  { %v922_v46 = vpop.permute.xlu1 %921 }
0x130a   :  { %925 = vst.msk [vmem:[#allocation2 + $0x30] sm:$0xff] %vm82_vm1, %v922_v46  ;;  %2273 = vmatmul.mubr.msk.f32.vlgmr.msra.gmra.mxu1 %vm82_vm1, %v922_v46 }
0x130b   :  { %2296 = vmatpush3.msra.mxu1 %v2830_v40  ;;  %2303 = vmatprep.mubr.msk.f32.mxu1 %vm2613_vm0, %v2612_v0 }
0x130c   :  { %2297 = vmatprep.subr.mxu1 %v2612_v0 }
0x130d   :  { %2298 = vmatpush3.msra.mxu1 %v2833_v41 }
0x130e   :  { %2299 = vmatprep.subr.mxu1 %v2612_v0 }
0x130f   :  { %2300 = vmatpush3.msra.mxu1 %v2837_v42 }
0x1310   :  { %2301 = vmatprep.subr.mxu1 %v2612_v0 }
0x1311   :  { %2302 = vmatpush3.msra.mxu1 %v2841_v43  ;;  %v1046_v47 = vld [vmem:[#allocation2 + $0x30] sm:$0xff] }
0x1312   :  { %2304 = vmatmul.mubr.f32.vlgmr.msra.gmra.mxu1 %v2612_v0  ;;  %2292 = vmatprep.mubr.msk.f32.mxu0 %vm82_vm1, %v1046_v47  ;;  %v2288_v47 = vpop.f32.mrf.mxu0 }
0x1313   :  { %2306 = vmatprep.subr.mxu1 %v2612_v0  ;;  %2314 = vmatprep.mubr.msk.f32.mxu1 %vm2613_vm0, %v2612_v0 }
0x1314   :  { %2307 = vmatpush3.msra.mxu1 %v2830_v40 }
0x1315   :  { %2308 = vmatprep.subr.mxu1 %v2612_v0 }
0x1316   :  { %2309 = vmatpush3.msra.mxu1 %v2833_v41 }
0x1317   :  { %2310 = vmatprep.subr.mxu1 %v2612_v0 }
0x1318   :  { %2311 = vmatpush3.msra.mxu1 %v2837_v42 }
0x1319   :  { %2312 = vmatprep.subr.mxu1 %v2612_v0 }
0x131a   :  { %2313 = vmatpush3.msra.mxu1 %v2841_v43 }
0x131b   :  { %2328 = vmatprep.subr.mxu1 %v2612_v0 }
0x13ca   :  { %v994_v50 = vpop.f32.mrf.mxu1 }
0x13cb   :  { %v995_v51 = vadd.f32 %v994_v50, %v209_v48  ;;  %v1154_v48 = vpop.f32.mrf.mxu0 }
0x13cc   :  { %v2274_v52 = vpop.f32.mrf.mxu1  ;;  %v1155_v53 = vadd.f32 %v2878_v54, %v1154_v48 }
0x13cd   :  { %v2037_v8 = vmul.f32 -1.442695, %v995_v51  ;;  %v2924_v49 = vpop.f32.mrf.mxu0 }
0x13cf   :  { %v2926_v50 = vpop.f32.mrf.mxu0 }
0x13d2   :  { %v1249_v56 = vpop.f32.mrf.mxu1 }
0x13d3   :  { %v1250_v57 = vadd.f32 %v1249_v56, %v1145_v55 }
0x13d4   :  { %v2305_v3 = vpop.f32.mrf.mxu1 }
0x13d5   :  { %2449 = vtanh.f32 %v1250_v57  ;;  %v2048_v13 = vmul.f32 -1.442695, %v1250_v57 }
0x13d7   :  { %2451 = vpow2.f32 %v2048_v13 }
0x13e2   :  { %v2450_v59 = vpop.eup %2449 }
0x13e3   :  { %1262 = vrot.lane.b32.xlu0 %v2450_v59, %s2614_s5 }
0x13e4   :  { %v2452_v60 = vpop.eup %2451 }
0x13e5   :  { %v1256_v62 = vadd.f32 1.0, %v2452_v60 }
0x13e7   :  { %2453 = vrcp.f32 %v1256_v62 }
0x13f4   :  { %v2454_v63 = vpop.eup %2453 }
0x13f5   :  { %v1260_v2 = vmul.f32 0.0, %v2454_v63 }
0x1455   :  { %v1263_v1 = vpop.permute.xlu0 %1262 }
0x1456   :  { %v1265_v4 = vmul.f32 %v2454_v63, %v1263_v1 }
0x1458   :  { %1267 = vrot.lane.b32.xlu1 %v1265_v4, %s2614_s5 }
0x14ca   :  { %v1268_v7 = vpop.permute.xlu1 %1267 }
0x14cb   :  { %v1270_v5 = vadd.f32 %v1268_v7, %v1260_v2 }
0x14cd   :  { %2455 = vtanh.f32 %v1270_v5 }
0x14ce   :  { %2457 = vtanh.f32 %v995_v51 }
0x14cf   :  { %2459 = vpow2.f32 %v2037_v8 }
0x14da   :  { %v2456_v6 = vpop.eup %2455 }
0x14db   :  { %1273 = vrot.lane.b32.xlu0 %v2456_v6, %s2614_s5  ;;  %v2458_v9 = vpop.eup %2457 }
0x14dc   :  { %v2460_v10 = vpop.eup %2459 }
0x14dd   :  { %v1001_v58 = vadd.f32 1.0, %v2460_v10  ;;  %v1160_v10 = vadd.f32 %v2288_v47, %v2878_v54 }
0x14df   :  { %1007 = vrot.lane.b32.xlu0 %v2458_v9, %s2614_s5  ;;  %2461 = vrcp.f32 %v1001_v58 }
0x14ec   :  { %v2462_v14 = vpop.eup %2461 }
0x14ed   :  { %v1005_v18 = vmul.f32 %v2462_v14, %v2826_v61 }
0x154d   :  { %v1274_v11 = vpop.permute.xlu0 %1273 }
0x154e   :  { %v1276_v12 = vmul.f32 %v2454_v63, %v1274_v11 }
0x1550   :  { %1278 = vrot.lane.b32.xlu1 %v1276_v12, %s2615_s6 }
0x1551   :  { %v1008_v15 = vpop.permute.xlu0 %1007 }
0x1552   :  { %v1010_v16 = vmul.f32 %v2462_v14, %v1008_v15 }
0x1554   :  { %1012 = vrot.lane.b32.xlu0 %v1010_v16, %s2614_s5 }
0x15c2   :  { %v1279_v17 = vpop.permute.xlu1 %1278 }
0x15c3   :  { %1281 = vst.msk [vmem:[#allocation9] sm:$0xff] %vm82_vm1, %v1279_v17  ;;  %2315 = vmatmul.mubr.msk.f32.vlgmr.msra.gmra.mxu1 %vm82_vm1, %v1279_v17 }
0x15c4   :  { %2329 = vmatpush3.msra.mxu1 %v2830_v40  ;;  %2336 = vmatprep.mubr.msk.f32.mxu1 %vm2613_vm0, %v2612_v0 }
0x15c5   :  { %2330 = vmatprep.subr.mxu1 %v2612_v0 }
0x15c6   :  { %v1013_v19 = vpop.permute.xlu0 %1012  ;;  %2331 = vmatpush3.msra.mxu1 %v2833_v41 }
0x15c7   :  { %v1015_v20 = vadd.f32 %v1013_v19, %v1005_v18  ;;  %2332 = vmatprep.subr.mxu1 %v2612_v0 }
0x15c8   :  { %2333 = vmatpush3.msra.mxu1 %v2837_v42 }
0x15c9   :  { %2463 = vtanh.f32 %v1015_v20  ;;  %2334 = vmatprep.subr.mxu1 %v2612_v0 }
0x15ca   :  { %2335 = vmatpush3.msra.mxu1 %v2841_v43 }
0x15cb   :  { %2350 = vmatprep.subr.mxu1 %v2612_v0 }
0x15d6   :  { %v2464_v21 = vpop.eup %2463 }
0x15d7   :  { %1018 = vrot.lane.b32.xlu0 %v2464_v21, %s2614_s5 }
0x1649   :  { %v1019_v22 = vpop.permute.xlu0 %1018 }
0x164a   :  { %v1021_v23 = vmul.f32 %v2462_v14, %v1019_v22 }
0x164c   :  { %1023 = vrot.lane.b32.xlu0 %v1021_v23, %s2615_s6 }
0x1683   :  { %v1350_v25 = vpop.f32.mrf.mxu1 }
0x1684   :  { %v1351_v26 = vadd.f32 %v1350_v25, %v1150_v24 }
0x1685   :  { %v2316_v27 = vpop.f32.mrf.mxu1 }
0x1686   :  { %2465 = vtanh.f32 %v1351_v26  ;;  %v2050_v31 = vmul.f32 -1.442695, %v1351_v26 }
0x1688   :  { %2467 = vpow2.f32 %v2050_v31 }
0x1693   :  { %v2466_v28 = vpop.eup %2465 }
0x1694   :  { %1363 = vrot.lane.b32.xlu1 %v2466_v28, %s2614_s5  ;;  %v1165_v28 = vadd.f32 %v2878_v54, %v2926_v50  ;;  %v1170_v50 = vadd.f32 %v2924_v49, %v2878_v54 }
0x1695   :  { %v2468_v32 = vpop.eup %2467 }
0x1696   :  { %v1357_v33 = vadd.f32 1.0, %v2468_v32 }
0x1698   :  { %2469 = vrcp.f32 %v1357_v33 }
0x16a5   :  { %v2470_v34 = vpop.eup %2469 }
0x16a6   :  { %v1361_v37 = vmul.f32 %v2470_v34, %v1270_v5 }
0x16be   :  { %v1024_v29 = vpop.permute.xlu0 %1023 }
0x16bf   :  { %1027 = vst.msk [vmem:[#allocation2 + $0x38] sm:$0xff] %vm82_vm1, %v1024_v29 }
0x16c6   :  { %v1047_v30 = vld [vmem:[#allocation2 + $0x38] sm:$0xff] }
0x16c7   :  { %2293 = vmatmul.mubr.msk.f32.gmra.mxu0 %vm82_vm1, %v1047_v30 }
0x16c8   :  { %2325 = vmatprep.mubr.msk.f32.mxu0 %vm2613_vm0, %v2612_v0 }
0x1706   :  { %v1364_v35 = vpop.permute.xlu1 %1363 }
0x1707   :  { %v1366_v36 = vmul.f32 %v2470_v34, %v1364_v35 }
0x1709   :  { %1368 = vrot.lane.b32.xlu1 %v1366_v36, %s2614_s5 }
0x177b   :  { %v1369_v38 = vpop.permute.xlu1 %1368 }
0x177c   :  { %v1371_v61 = vadd.f32 %v1369_v38, %v1361_v37 }
0x177e   :  { %2471 = vtanh.f32 %v1371_v61 }
0x1787   :  { %v2928_v51 = vpop.f32.mrf.mxu0 }
0x1789   :  { %v2930_v52 = vpop.f32.mrf.mxu0 }
0x178b   :  { %v2472_v39 = vpop.eup %2471 }
0x178c   :  { %1374 = vrot.lane.b32.xlu1 %v2472_v39, %s2614_s5 }
0x17fe   :  { %v1375_v44 = vpop.permute.xlu1 %1374 }
0x17ff   :  { %v1377_v45 = vmul.f32 %v2470_v34, %v1375_v44 }
0x1801   :  { %1379 = vrot.lane.b32.xlu1 %v1377_v45, %s2615_s6 }
0x1873   :  { %v1380_v46 = vpop.permute.xlu1 %1379 }
0x1874   :  { %1383 = vst.msk [vmem:[#allocation9 + $0x8] sm:$0xff] %vm82_vm1, %v1380_v46  ;;  %2326 = vmatmul.mubr.msk.f32.vlgmr.msra.gmra.mxu0 %vm82_vm1, %v1380_v46 }
0x1875   :  { %2340 = vmatpush3.msra.mxu0 %v2830_v40  ;;  %2347 = vmatprep.mubr.msk.f32.mxu0 %vm2613_vm0, %v2612_v0 }
0x1876   :  { %2341 = vmatprep.subr.mxu0 %v2612_v0 }
0x1877   :  { %2342 = vmatpush3.msra.mxu0 %v2833_v41 }
0x1878   :  { %2343 = vmatprep.subr.mxu0 %v2612_v0 }
0x1879   :  { %2344 = vmatpush3.msra.mxu0 %v2837_v42 }
0x187a   :  { %2345 = vmatprep.subr.mxu0 %v2612_v0 }
0x187b   :  { %2346 = vmatpush3.msra.mxu0 %v2841_v43 }
0x187c   :  { %2361 = vmatprep.subr.mxu0 %v2612_v0 }
0x1934   :  { %v1452_v55 = vpop.f32.mrf.mxu0 }
0x1935   :  { %v1453_v56 = vadd.f32 %v1452_v55, %v1155_v53 }
0x1936   :  { %v2327_v57 = vpop.f32.mrf.mxu0 }
0x1937   :  { %2473 = vtanh.f32 %v1453_v56  ;;  %v2052_v59 = vmul.f32 -1.442695, %v1453_v56 }
0x1939   :  { %2475 = vpow2.f32 %v2052_v59 }
0x1944   :  { %v2474_v3 = vpop.eup %2473 }
0x1945   :  { %1465 = vrot.lane.b32.xlu0 %v2474_v3, %s2614_s5 }
0x1946   :  { %v2476_v13 = vpop.eup %2475 }
0x1947   :  { %v1459_v60 = vadd.f32 1.0, %v2476_v13 }
0x1949   :  { %2477 = vrcp.f32 %v1459_v60 }
0x1956   :  { %v2478_v62 = vpop.eup %2477 }
0x1957   :  { %v1463_v4 = vmul.f32 %v2478_v62, %v1371_v61 }
0x19b7   :  { %v1466_v63 = vpop.permute.xlu0 %1465 }
0x19b8   :  { %v1468_v1 = vmul.f32 %v2478_v62, %v1466_v63 }
0x19ba   :  { %1470 = vrot.lane.b32.xlu1 %v1468_v1, %s2614_s5 }
0x1a2c   :  { %v1471_v2 = vpop.permute.xlu1 %1470 }
0x1a2d   :  { %v1473_v7 = vadd.f32 %v1471_v2, %v1463_v4  ;;  %v1175_v4 = vadd.f32 %v2878_v54, %v2930_v52 }
0x1a2f   :  { %2479 = vtanh.f32 %v1473_v7 }
0x1a3c   :  { %v2480_v5 = vpop.eup %2479 }
0x1a3d   :  { %1476 = vrot.lane.b32.xlu0 %v2480_v5, %s2614_s5 }
0x1aaf   :  { %v1477_v6 = vpop.permute.xlu0 %1476 }
0x1ab0   :  { %v1479_v9 = vmul.f32 %v2478_v62, %v1477_v6 }
0x1ab2   :  { %1481 = vrot.lane.b32.xlu1 %v1479_v9, %s2615_s6 }
0x1b24   :  { %v1482_v8 = vpop.permute.xlu1 %1481 }
0x1b25   :  { %1485 = vst.msk [vmem:[#allocation9 + $0x10] sm:$0xff] %vm82_vm1, %v1482_v8  ;;  %2337 = vmatmul.mubr.msk.f32.vlgmr.msra.gmra.mxu1 %vm82_vm1, %v1482_v8 }
0x1b26   :  { %2351 = vmatpush3.msra.mxu1 %v2830_v40  ;;  %2358 = vmatprep.mubr.msk.f32.mxu1 %vm2613_vm0, %v2612_v0 }
0x1b27   :  { %2352 = vmatprep.subr.mxu1 %v2612_v0 }
0x1b28   :  { %2353 = vmatpush3.msra.mxu1 %v2833_v41 }
0x1b29   :  { %2354 = vmatprep.subr.mxu1 %v2612_v0 }
0x1b2a   :  { %2355 = vmatpush3.msra.mxu1 %v2837_v42 }
0x1b2b   :  { %2356 = vmatprep.subr.mxu1 %v2612_v0 }
0x1b2c   :  { %2357 = vmatpush3.msra.mxu1 %v2841_v43 }
0x1b2d   :  { %2372 = vmatprep.subr.mxu1 %v2612_v0 }
0x1be5   :  { %v1554_v58 = vpop.f32.mrf.mxu1 }
0x1be6   :  { %v1555_v11 = vadd.f32 %v1554_v58, %v1160_v10 }
0x1be7   :  { %v2338_v12 = vpop.f32.mrf.mxu1 }
0x1be8   :  { %2481 = vtanh.f32 %v1555_v11  ;;  %v2054_v15 = vmul.f32 -1.442695, %v1555_v11 }
0x1bea   :  { %2483 = vpow2.f32 %v2054_v15 }
0x1bf5   :  { %v2482_v14 = vpop.eup %2481 }
0x1bf6   :  { %1567 = vrot.lane.b32.xlu0 %v2482_v14, %s2614_s5 }
0x1bf7   :  { %v2484_v16 = vpop.eup %2483 }
0x1bf8   :  { %v1561_v17 = vadd.f32 1.0, %v2484_v16 }
0x1bfa   :  { %2485 = vrcp.f32 %v1561_v17 }
0x1c07   :  { %v2486_v18 = vpop.eup %2485 }
0x1c08   :  { %v1565_v21 = vmul.f32 %v2486_v18, %v1473_v7 }
0x1c68   :  { %v1568_v19 = vpop.permute.xlu0 %1567 }
0x1c69   :  { %v1570_v20 = vmul.f32 %v2486_v18, %v1568_v19 }
0x1c6b   :  { %1572 = vrot.lane.b32.xlu1 %v1570_v20, %s2614_s5  ;;  %v1180_v20 = vadd.f32 %v2928_v51, %v2878_v54 }
0x1cdd   :  { %v1573_v22 = vpop.permute.xlu1 %1572 }
0x1cde   :  { %v1575_v23 = vadd.f32 %v1573_v22, %v1565_v21 }
0x1ce0   :  { %2487 = vtanh.f32 %v1575_v23 }
0x1ced   :  { %v2488_v24 = vpop.eup %2487 }
0x1cee   :  { %1578 = vrot.lane.b32.xlu0 %v2488_v24, %s2614_s5 }
0x1d60   :  { %v1579_v25 = vpop.permute.xlu0 %1578 }
0x1d61   :  { %v1581_v26 = vmul.f32 %v2486_v18, %v1579_v25 }
0x1d63   :  { %1583 = vrot.lane.b32.xlu1 %v1581_v26, %s2615_s6 }
0x1dd5   :  { %v1584_v27 = vpop.permute.xlu1 %1583 }
0x1dd6   :  { %1587 = vst.msk [vmem:[#allocation9 + $0x18] sm:$0xff] %vm82_vm1, %v1584_v27  ;;  %2348 = vmatmul.mubr.msk.f32.vlgmr.msra.gmra.mxu0 %vm82_vm1, %v1584_v27 }
0x1dd7   :  { %2362 = vmatpush3.msra.mxu0 %v2830_v40  ;;  %2369 = vmatprep.mubr.msk.f32.mxu0 %vm2613_vm0, %v2612_v0 }
0x1dd8   :  { %2363 = vmatprep.subr.mxu0 %v2612_v0 }
0x1dd9   :  { %2364 = vmatpush3.msra.mxu0 %v2833_v41 }
0x1dda   :  { %2365 = vmatprep.subr.mxu0 %v2612_v0 }
0x1ddb   :  { %2366 = vmatpush3.msra.mxu0 %v2837_v42 }
0x1ddc   :  { %2367 = vmatprep.subr.mxu0 %v2612_v0 }
0x1ddd   :  { %2368 = vmatpush3.msra.mxu0 %v2841_v43 }
0x1e96   :  { %v1656_v29 = vpop.f32.mrf.mxu0 }
0x1e97   :  { %v1657_v30 = vadd.f32 %v1656_v29, %v1165_v28 }
0x1e98   :  { %v2349_v31 = vpop.f32.mrf.mxu0 }
0x1e99   :  { %2489 = vtanh.f32 %v1657_v30  ;;  %v2056_v33 = vmul.f32 -1.442695, %v1657_v30 }
0x1e9b   :  { %2491 = vpow2.f32 %v2056_v33 }
0x1ea6   :  { %v2490_v32 = vpop.eup %2489 }
0x1ea7   :  { %1669 = vrot.lane.b32.xlu0 %v2490_v32, %s2614_s5 }
0x1ea8   :  { %v2492_v34 = vpop.eup %2491 }
0x1ea9   :  { %v1663_v35 = vadd.f32 1.0, %v2492_v34 }
0x1eab   :  { %2493 = vrcp.f32 %v1663_v35 }
0x1eb8   :  { %v2494_v36 = vpop.eup %2493 }
0x1eb9   :  { %v1667_v61 = vmul.f32 %v2494_v36, %v1575_v23 }
0x1f19   :  { %v1670_v37 = vpop.permute.xlu0 %1669 }
0x1f1a   :  { %v1672_v38 = vmul.f32 %v2494_v36, %v1670_v37 }
0x1f1c   :  { %1674 = vrot.lane.b32.xlu1 %v1672_v38, %s2614_s5 }
0x1f8e   :  { %v1675_v39 = vpop.permute.xlu1 %1674 }
0x1f8f   :  { %v1677_v44 = vadd.f32 %v1675_v39, %v1667_v61 }
0x1f91   :  { %2495 = vtanh.f32 %v1677_v44 }
0x1f9e   :  { %v2496_v45 = vpop.eup %2495 }
0x1f9f   :  { %1680 = vrot.lane.b32.xlu0 %v2496_v45, %s2614_s5 }
0x2011   :  { %v1681_v46 = vpop.permute.xlu0 %1680 }
0x2012   :  { %v1683_v47 = vmul.f32 %v2494_v36, %v1681_v46 }
0x2014   :  { %1685 = vrot.lane.b32.xlu1 %v1683_v47, %s2615_s6 }
0x2086   :  { %v1686_v48 = vpop.permute.xlu1 %1685 }
0x2087   :  { %1689 = vst.msk [vmem:[#allocation9 + $0x20] sm:$0xff] %vm82_vm1, %v1686_v48  ;;  %2359 = vmatmul.mubr.msk.f32.vlgmr.msra.gmra.mxu1 %vm82_vm1, %v1686_v48 }
0x2088   :  { %2373 = vmatpush3.msra.mxu1 %v2830_v40  ;;  %2380 = vmatprep.mubr.msk.f32.mxu1 %vm2613_vm0, %v2612_v0 }
0x2089   :  { %2374 = vmatprep.subr.mxu1 %v2612_v0 }
0x208a   :  { %2375 = vmatpush3.msra.mxu1 %v2833_v41 }
0x208b   :  { %2376 = vmatprep.subr.mxu1 %v2612_v0 }
0x208c   :  { %2377 = vmatpush3.msra.mxu1 %v2837_v42 }
0x208d   :  { %2378 = vmatprep.subr.mxu1 %v2612_v0 }
0x208e   :  { %2379 = vmatpush3.msra.mxu1 %v2841_v43 }
0x2147   :  { %v1758_v53 = vpop.f32.mrf.mxu1 }
0x2148   :  { %v1759_v40 = vadd.f32 %v1758_v53, %v1170_v50 }
0x2149   :  { %v2360_v55 = vpop.f32.mrf.mxu1 }
0x214a   :  { %2497 = vtanh.f32 %v1759_v40  ;;  %v2058_v57 = vmul.f32 -1.442695, %v1759_v40 }
0x214c   :  { %2499 = vpow2.f32 %v2058_v57 }
0x2157   :  { %v2498_v56 = vpop.eup %2497 }
0x2158   :  { %1771 = vrot.lane.b32.xlu0 %v2498_v56, %s2614_s5 }
0x2159   :  { %v2500_v41 = vpop.eup %2499 }
0x215a   :  { %v1765_v3 = vadd.f32 1.0, %v2500_v41 }
0x215c   :  { %2501 = vrcp.f32 %v1765_v3 }
0x2169   :  { %v2502_v42 = vpop.eup %2501 }
0x216a   :  { %v1769_v43 = vmul.f32 %v2502_v42, %v1677_v44 }
0x21ca   :  { %v1772_v59 = vpop.permute.xlu0 %1771 }
0x21cb   :  { %v1774_v0 = vmul.f32 %v2502_v42, %v1772_v59 }
0x21cd   :  { %1776 = vrot.lane.b32.xlu1 %v1774_v0, %s2614_s5 }
0x223f   :  { %v1777_v13 = vpop.permute.xlu1 %1776 }
0x2240   :  { %v1779_v49 = vadd.f32 %v1777_v13, %v1769_v43 }
0x2242   :  { %2503 = vtanh.f32 %v1779_v49 }
0x224f   :  { %v2504_v60 = vpop.eup %2503 }
0x2250   :  { %1782 = vrot.lane.b32.xlu0 %v2504_v60, %s2614_s5 }
0x22c2   :  { %v1783_v62 = vpop.permute.xlu0 %1782 }
0x22c3   :  { %v1785_v63 = vmul.f32 %v2502_v42, %v1783_v62 }
0x22c5   :  { %1787 = vrot.lane.b32.xlu1 %v1785_v63, %s2615_s6 }
0x2337   :  { %v1788_v1 = vpop.permute.xlu1 %1787 }
0x2338   :  { %1791 = vst.msk [vmem:[#allocation9 + $0x28] sm:$0xff] %vm82_vm1, %v1788_v1  ;;  %2370 = vmatmul.mubr.msk.f32.vlgmr.msra.gmra.mxu0 %vm82_vm1, %v1788_v1 }
0x23f8   :  { %v1860_v2 = vpop.f32.mrf.mxu0 }
0x23f9   :  { %v1861_v7 = vadd.f32 %v1860_v2, %v1175_v4 }
0x23fa   :  { %v2371_v5 = vpop.f32.mrf.mxu0 }
0x23fb   :  { %2505 = vtanh.f32 %v1861_v7  ;;  %v2060_v9 = vmul.f32 -1.442695, %v1861_v7 }
0x23fd   :  { %2507 = vpow2.f32 %v2060_v9 }
0x2408   :  { %v2506_v6 = vpop.eup %2505 }
0x2409   :  { %1873 = vrot.lane.b32.xlu0 %v2506_v6, %s2614_s5 }
0x240a   :  { %v2508_v8 = vpop.eup %2507 }
0x240b   :  { %v1867_v10 = vadd.f32 1.0, %v2508_v8 }
0x240d   :  { %2509 = vrcp.f32 %v1867_v10 }
0x241a   :  { %v2510_v58 = vpop.eup %2509 }
0x241b   :  { %v1871_v14 = vmul.f32 %v2510_v58, %v1779_v49 }
0x247b   :  { %v1874_v11 = vpop.permute.xlu0 %1873 }
0x247c   :  { %v1876_v12 = vmul.f32 %v2510_v58, %v1874_v11 }
0x247e   :  { %1878 = vrot.lane.b32.xlu1 %v1876_v12, %s2614_s5 }
0x24f0   :  { %v1879_v15 = vpop.permute.xlu1 %1878 }
0x24f1   :  { %v1881_v52 = vadd.f32 %v1879_v15, %v1871_v14 }
0x24f3   :  { %2511 = vtanh.f32 %v1881_v52 }
0x2500   :  { %v2512_v16 = vpop.eup %2511 }
0x2501   :  { %1884 = vrot.lane.b32.xlu0 %v2512_v16, %s2614_s5 }
0x2573   :  { %v1885_v17 = vpop.permute.xlu0 %1884 }
0x2574   :  { %v1887_v18 = vmul.f32 %v2510_v58, %v1885_v17 }
0x2576   :  { %1889 = vrot.lane.b32.xlu1 %v1887_v18, %s2615_s6 }
0x25e8   :  { %v1890_v19 = vpop.permute.xlu1 %1889 }
0x25e9   :  { %1893 = vst.msk [vmem:[#allocation9 + $0x30] sm:$0xff] %vm82_vm1, %v1890_v19  ;;  %2381 = vmatmul.mubr.msk.f32.vlgmr.msra.gmra.mxu1 %vm82_vm1, %v1890_v19 }
0x26a9   :  { %v1962_v21 = vpop.f32.mrf.mxu1 }
0x26aa   :  { %v1963_v22 = vadd.f32 %v1962_v21, %v1180_v20 }
0x26ab   :  { %v2382_v23 = vpop.f32.mrf.mxu1 }
0x26ac   :  { %2513 = vtanh.f32 %v1963_v22  ;;  %v2062_v25 = vmul.f32 -1.442695, %v1963_v22 }
0x26ae   :  { %2515 = vpow2.f32 %v2062_v25 }
0x26b9   :  { %v2514_v24 = vpop.eup %2513 }
0x26ba   :  { %1975 = vrot.lane.b32.xlu0 %v2514_v24, %s2614_s5 }
0x26bb   :  { %v2516_v26 = vpop.eup %2515 }
0x26bc   :  { %v1969_v27 = vadd.f32 1.0, %v2516_v26 }
0x26be   :  { %2517 = vrcp.f32 %v1969_v27 }
0x26cb   :  { %v2518_v28 = vpop.eup %2517 }
0x26cc   :  { %v1973_v31 = vmul.f32 %v2518_v28, %v1881_v52 }
0x272c   :  { %v1976_v29 = vpop.permute.xlu0 %1975 }
0x272d   :  { %v1978_v30 = vmul.f32 %v2518_v28, %v1976_v29 }
0x272f   :  { %1980 = vrot.lane.b32.xlu1 %v1978_v30, %s2614_s5 }
0x27a1   :  { %v1981_v32 = vpop.permute.xlu1 %1980 }
0x27a2   :  { %v1983_v54 = vadd.f32 %v1981_v32, %v1973_v31 }
0x27a4   :  { %2519 = vtanh.f32 %v1983_v54 }
0x27b1   :  { %v2520_v51 = vpop.eup %2519 }
0x27b2   :  { %1986 = vrot.lane.b32.xlu0 %v2520_v51, %s2614_s5 }
0x2824   :  { %v1987_v33 = vpop.permute.xlu0 %1986 }
0x2825   :  { %v1989_v34 = vmul.f32 %v2518_v28, %v1987_v33 }
0x2827   :  { %1991 = vrot.lane.b32.xlu1 %v1989_v34, %s2615_s6 }
0x2899   :  { %v1992_v35 = vpop.permute.xlu1 %1991 }
0x289a   :  { %1995 = vst.msk [vmem:[#allocation9 + $0x38] sm:$0xff] %vm82_vm1, %v1992_v35 }
0x289b   :  { %2592 = shalt.err (!%p2589_p5)
}
0x289c   :  { %2007 = dma.vmem_to_hbm [thread:$0]  %s2002_s9, 1024, %s3015_s4, [#allocation5], %s2609_s20, %s2609_s20, %s2610_s21  }
0x289d   :  { %2605 = dma.done.wait [#allocation5], 1024  }
0x289e   :  { %2606 = vsyncadd [#allocation5], 4294966272 }
0x289f   :  { %2011 = vsyncpa [#allocation4], 1 }
0x28a0   :  { %2012 = vsyncpa [#allocation7], 1 }
0x28a1   :  { %2013 = vsyncpa [#allocation5], 1 }

</bundles_post_ra>
